<compile_context>
chip_gen: v6e
topology: v6e:2x2x1
jax: 0.10.0
libtpu: 0.0.40
codegen_flags: <defaults>
</compile_context>

<pallas_src>
import jax
import jax.numpy as jnp
from jax import lax
from jax.experimental import pallas as pl
from jax.experimental.pallas import tpu as pltpu

NUM_CLASSES = 11

# ---------------------------------------------------------------------------
# Fixed geometry implied by the module (H=128 baked in via calc_next(128,...)).
# ---------------------------------------------------------------------------
K_C, S_C, C_C = 5, 5, 20          # complex conv kernel / stride / out channels
HO = (128 - K_C) // S_C + 1       # 25 complex-conv positions
H1 = HO - 5 + 1                   # 21 conv_1 positions
P1 = H1 // 2                      # 10 positions after mp_1
C1 = 40
H2 = P1 - 5 + 1                   # 6 conv_2 positions
P2 = H2 // 2                      # 3 positions after mp_2
C2 = 60
C3 = 80                           # conv_3 out channels (1 position)
L2 = 40                           # linear_2 out features

# Lane-padded feature widths (all multiples of 128).
F0 = 128                          # window features   (HO*K_C = 125 real)
F1 = 512                          # complex/dist feat (HO*C_C = 500 real)
F2 = 512                          # pooled conv_1     (P1*C1  = 400 real)
F3 = 256                          # pooled conv_2     (P2*C2  = 180 real)
F4 = 128                          # conv_3 / linears / logits lanes

# Packed bf16 weight buffer: row offsets (every block starts 8-aligned and
# reserves exactly the padded K dim of the matmul that consumes it).
R_WB = 0                          # complex block-diag taps      K=F0, N=F1
R_T1E = R_WB + F0                 # conv_1 Toeplitz (even pos)   K=F1, N=F2
R_T1O = R_T1E + F1                # conv_1 Toeplitz (odd pos)
R_T2E = R_T1O + F1                # conv_2 Toeplitz (even pos)   K=F2, N=F3
R_T2O = R_T2E + F2                # conv_2 Toeplitz (odd pos)
R_T3 = R_T2O + F2                 # conv_3 Toeplitz              K=F3, N=F4
R_L2 = R_T3 + F3                  # linear_2                     K=F4, N=F4
R_L3 = R_L2 + F4                  # linear_3                     K=F4, N=F4
RW = R_L3 + F4                    # 2688 packed weight rows
WCOLS = 512
NVROW = 8                         # packed f32 vector rows (7 used)


# ---------------------------------------------------------------------------
# Single fused Pallas kernel: one grid step == TB batch samples.
# Activation layout: [batch row (sublane), flat feature (lane)].
# ---------------------------------------------------------------------------
def _fused_forward_kernel(logr_ref, th_ref, w_ref, v_ref, out_ref):
    f32 = jnp.float32
    bf16 = jnp.bfloat16

    def W(r0, k, n):                      # static weight-block view (bf16)
        return w_ref[r0:r0 + k, 0:n]

    def V(row, n):                        # [1, n] f32 vector, broadcasts on TB
        return v_ref[row:row + 1, 0:n]

    # ---------------- complex front-end (reconstructed, see header) --------
    wb = W(R_WB, F0, F1)                                       # block-diag taps
    conv_logr = jnp.dot(logr_ref[...].astype(bf16), wb,
                        preferred_element_type=f32)            # [TB, F1]
    conv_th = jnp.dot(th_ref[...].astype(bf16), wb,
                      preferred_element_type=f32)              # [TB, F1]

    # ReLU4Dsp: learned non-negative magnitude offset, stable logaddexp form:
    # log(exp(a) + w) = max(a, log w) + log(1 + exp(min - max)).
    lw = V(0, F1)
    m = jnp.maximum(conv_logr, lw)
    logr2 = m + jnp.log(1.0 + jnp.exp(jnp.minimum(conv_logr, lw) - m))

    # SURE: distance of each response to the weighted Frechet mean (lane
    # reduce on the XLU; padded lanes carry zero weight).
    wl = V(1, F1)
    fm_r = jnp.sum(logr2 * wl, axis=-1, keepdims=True)         # [TB, 1]
    fm_t = jnp.sum(conv_th * wl, axis=-1, keepdims=True)
    dist = jnp.sqrt((logr2 - fm_r) ** 2 + (conv_th - fm_t) ** 2)
    # self.relu(x2) is a no-op: manifold distances are already non-negative.
    dist = dist.astype(bf16)

    # ------------- conv_1 + bn_1 + relu + mp_1 (even/odd Toeplitz) ---------
    y_e = jnp.dot(dist, W(R_T1E, F1, F2), preferred_element_type=f32)
    y_o = jnp.dot(dist, W(R_T1O, F1, F2), preferred_element_type=f32)
    y = jnp.maximum(jnp.maximum(y_e, y_o) + V(2, F2), 0.0).astype(bf16)

    # ------------- conv_2 + bn_2 + relu + mp_2 (even/odd Toeplitz) ---------
    y_e = jnp.dot(y, W(R_T2E, F2, F3), preferred_element_type=f32)
    y_o = jnp.dot(y, W(R_T2O, F2, F3), preferred_element_type=f32)
    y = jnp.maximum(jnp.maximum(y_e, y_o) + V(3, F3), 0.0).astype(bf16)

    # ------------- conv_3 + relu (no BN in the reference forward) ----------
    y = jnp.dot(y, W(R_T3, F3, F4), preferred_element_type=f32)
    y = jnp.maximum(y + V(4, F4), 0.0).astype(bf16)

    # ------------- linear_2 + relu (dropout = eval identity) ---------------
    y = jnp.dot(y, W(R_L2, F4, F4), preferred_element_type=f32)
    y = jnp.maximum(y + V(5, F4), 0.0).astype(bf16)

    # ------------- linear_3 (lane-padded logits, dense store) --------------
    y = jnp.dot(y, W(R_L3, F4, F4), preferred_element_type=f32) + V(6, F4)
    out_ref[...] = y.astype(out_ref.dtype)                     # [TB, 128]


# ---------------------------------------------------------------------------
# Wrapper: weight folding (Toeplitz + BN) + tiny XLA prologue + one pallas_call.
# ---------------------------------------------------------------------------
def test_forward(params, x, labels=None, tb=256):
    f32 = jnp.float32
    bf16 = jnp.bfloat16
    eps_bn = 1e-5
    B = x.shape[0]
    assert x.shape[3] == 128, "H=128 is baked into the module via calc_next"

    # --- tiny XLA prologue: cartesian -> polar, non-overlapping 5-tap wins --
    re = x[:, 0, 0, :, 0]
    im = x[:, 1, 0, :, 0]
    theta = jnp.arctan2(im, re)
    logr = jnp.log(jnp.sqrt(re * re + im * im) + 1e-6)
    win_r = logr[:, :HO * S_C].reshape(B, HO * K_C)            # [B, 125]
    win_t = theta[:, :HO * S_C].reshape(B, HO * K_C)

    # --- batch blocking: TB rows per grid step (pad batch, pad features) ---
    rup = lambda a, m: (a + m - 1) // m * m
    TB = max(8, min(rup(tb, 8), rup(B, 8)))   # 256 default; clamp tiny batches
    Bp = rup(B, TB)
    G = Bp // TB
    logr_in = jnp.zeros((Bp, F0), f32).at[:B, :HO * K_C].set(win_r)
    th_in = jnp.zeros((Bp, F0), f32).at[:B, :HO * K_C].set(win_t)

    # --- complex front-end weights (convex / non-negative constraints) -----
    wconv = jax.nn.softmax(params["wconv_raw"], axis=0)        # [5, 20]
    wrelu = jnp.abs(params["wrelu_raw"]).reshape(-1)           # [20]
    wlin = jax.nn.softmax(params["wlin_raw"].reshape(-1))      # [500]
    # Block-diagonal taps: WB[p*5+k, p*20+c] = wconv[k, c]
    WB = jnp.einsum("pq,kc->pkqc", jnp.eye(HO, dtype=f32),
                    wconv).reshape(HO * K_C, HO * C_C)         # [125, 500]

    # --- BN(eval) fold + block-Toeplitz construction for the conv tail -----
    def bn_fold(bias, gamma, beta, mean, var):
        scale = gamma * lax.rsqrt(var + eps_bn)
        shift = (bias - mean) * scale + beta
        return scale, shift

    def conv_toeplitz(w, scale, hin, hout):
        # w: [Co, Cin, kh] (torch Conv2d with W=1 squeezed) -> [hin*Cin, hout*Co]
        Co, Cin, kh = w.shape
        ws = jnp.transpose(w, (2, 1, 0)) * scale               # [kh, Cin, Co]
        sel = (jnp.arange(hin)[None, None, :] ==
               (jnp.arange(hout)[:, None, None] +
                jnp.arange(kh)[None, :, None])).astype(f32)    # [hout, kh, hin]
        return jnp.einsum("qkp,kio->piqo", sel, ws).reshape(hin * Cin, hout * Co)

    sc1, sh1 = bn_fold(params["conv1_b"], params["bn1_gamma"],
                       params["bn1_beta"], params["bn1_mean"], params["bn1_var"])
    T1 = conv_toeplitz(params["conv1_w"], sc1, HO, H1).reshape(HO * C_C, H1, C1)
    T1e = T1[:, 0:2 * P1:2, :].reshape(HO * C_C, P1 * C1)      # [500, 400]
    T1o = T1[:, 1:2 * P1:2, :].reshape(HO * C_C, P1 * C1)
    b1 = jnp.tile(sh1, P1)                                     # [400]

    sc2, sh2 = bn_fold(params["conv2_b"], params["bn2_gamma"],
                       params["bn2_beta"], params["bn2_mean"], params["bn2_var"])
    T2 = conv_toeplitz(params["conv2_w"], sc2, P1, H2).reshape(P1 * C1, H2, C2)
    T2e = T2[:, 0:2 * P2:2, :].reshape(P1 * C1, P2 * C2)       # [400, 180]
    T2o = T2[:, 1:2 * P2:2, :].reshape(P1 * C1, P2 * C2)
    b2 = jnp.tile(sh2, P2)                                     # [180]

    T3 = conv_toeplitz(params["conv3_w"], jnp.ones((C3,), f32), P2, 1)  # [180,80]
    b3 = params["conv3_b"]

    WL2 = params["lin2_w"].T                                   # [80, 40]
    WL3 = params["lin3_w"].T                                   # [40, 11]

    # --- pack weights into one bf16 buffer and vectors into one f32 buffer -
    def put(buf, r0, blk):
        k, n = blk.shape
        return buf.at[r0:r0 + k, 0:n].set(blk)

    Wpack = jnp.zeros((RW, WCOLS), f32)
    Wpack = put(Wpack, R_WB, WB)
    Wpack = put(Wpack, R_T1E, T1e)
    Wpack = put(Wpack, R_T1O, T1o)
    Wpack = put(Wpack, R_T2E, T2e)
    Wpack = put(Wpack, R_T2O, T2o)
    Wpack = put(Wpack, R_T3, T3)
    Wpack = put(Wpack, R_L2, WL2)
    Wpack = put(Wpack, R_L3, WL3)
    Wpack = Wpack.astype(bf16)

    Vpack = jnp.zeros((NVROW, WCOLS), f32)
    Vpack = Vpack.at[0, :HO * C_C].set(jnp.tile(jnp.log(wrelu + 1e-30), HO))
    Vpack = Vpack.at[1, :HO * C_C].set(wlin)
    Vpack = Vpack.at[2, :P1 * C1].set(b1)
    Vpack = Vpack.at[3, :P2 * C2].set(b2)
    Vpack = Vpack.at[4, :C3].set(b3)
    Vpack = Vpack.at[5, :L2].set(params["lin2_b"])
    Vpack = Vpack.at[6, :NUM_CLASSES].set(params["lin3_b"])

    # --- cost estimate (lets XLA overlap the polar prologue with the kernel)
    macs_per_row = (2 * F0 * F1 + 2 * F1 * F2 + 2 * F2 * F3 +
                    F3 * F4 + 2 * F4 * F4)
    cost = pl.CostEstimate(
        flops=2 * Bp * macs_per_row,
        transcendentals=3 * Bp * F1,
        bytes_accessed=(2 * Bp * F0 * 4 + RW * WCOLS * 2 +
                        NVROW * WCOLS * 4 + Bp * F4 * 4))

    out = pl.pallas_call(
        _fused_forward_kernel,
        out_shape=jax.ShapeDtypeStruct((Bp, F4), jnp.float32),
        grid=(G,),
        in_specs=[
            pl.BlockSpec((TB, F0), lambda g: (g, 0)),
            pl.BlockSpec((TB, F0), lambda g: (g, 0)),
            pl.BlockSpec((RW, WCOLS), lambda g: (0, 0)),
            pl.BlockSpec((NVROW, WCOLS), lambda g: (0, 0)),
        ],
        out_specs=pl.BlockSpec((TB, F4), lambda g: (g, 0)),
        compiler_params=pltpu.CompilerParams(
            dimension_semantics=("parallel",),
            vmem_limit_bytes=32 * 1024 * 1024),
        cost_estimate=cost,
    )(logr_in, th_in, Wpack, Vpack)

    logits = out[:B, :NUM_CLASSES]
    # labels is None -> SURE returns no loss -> res_loss = 0 in the reference.
    res_loss = jnp.zeros((1,), jnp.float32)
    return logits, res_loss


# ---------------------------------------------------------------------------
# Deterministic parameter init mirroring the module's layer shapes.
# ---------------------------------------------------------------------------
def init_params(key):
    ks = jax.random.split(key, 12)
    n = lambda k, shape, s: s * jax.random.normal(k, shape, jnp.float32)
    p = {}
    # complex_conv1 = ComplexConv2Deffangle4Dxy(1, 20, (5,1), (5,1))
    p["wconv_raw"] = n(ks[0], (5, 20), 1.0)
    # proj1 = ReLU4Dsp(20)
    p["wrelu_raw"] = n(ks[1], (1, 20), 1.0)
    # SURE = JS.SURE_pure4D(...) over 500 = 20ch * 25pos complex responses
    p["wlin_raw"] = n(ks[2], (25, 20), 1.0)
    # conv_1 = Conv2d(20, 40, (5,1)), bn_1 = BatchNorm2d(40)
    p["conv1_w"] = n(ks[3], (40, 20, 5), (1.0 / (20 * 5)) ** 0.5)
    p["conv1_b"] = jnp.zeros((40,), jnp.float32)
    p["bn1_gamma"] = jnp.ones((40,), jnp.float32)
    p["bn1_beta"] = jnp.zeros((40,), jnp.float32)
    p["bn1_mean"] = jnp.zeros((40,), jnp.float32)
    p["bn1_var"] = jnp.ones((40,), jnp.float32)
    # conv_2 = Conv2d(40, 60, (5,1)), bn_2 = BatchNorm2d(60)
    p["conv2_w"] = n(ks[4], (60, 40, 5), (1.0 / (40 * 5)) ** 0.5)
    p["conv2_b"] = jnp.zeros((60,), jnp.float32)
    p["bn2_gamma"] = jnp.ones((60,), jnp.float32)
    p["bn2_beta"] = jnp.zeros((60,), jnp.float32)
    p["bn2_mean"] = jnp.zeros((60,), jnp.float32)
    p["bn2_var"] = jnp.ones((60,), jnp.float32)
    # conv_3 = Conv2d(60, 80, (3,1))   (bn_3 defined but unused in forward)
    p["conv3_w"] = n(ks[5], (80, 60, 3), (1.0 / (60 * 3)) ** 0.5)
    p["conv3_b"] = jnp.zeros((80,), jnp.float32)
    # linear_2 = Linear(80, 40), linear_3 = Linear(40, 11)
    p["lin2_w"] = n(ks[6], (40, 80), (1.0 / 80) ** 0.5)
    p["lin2_b"] = jnp.zeros((40,), jnp.float32)
    p["lin3_w"] = n(ks[7], (11, 40), (1.0 / 40) ** 0.5)
    p["lin3_b"] = jnp.zeros((11,), jnp.float32)
    # loss_weight (only used when labels are given; labels=None here)
    p["loss_weight"] = jax.random.uniform(ks[8], (1,), jnp.float32)
    return p


if __name__ == "__main__":
    key = jax.random.PRNGKey(0)
    k_x, k_p = jax.random.split(key)
    # x: [B=2, 2(re,im), Cin=1, H=128, W=1]  (H=128 is baked into the module
    # via calc_next(128, (5,1), 5, 20) -> 500 SURE features).
    x = jax.random.normal(k_x, (2, 2, 1, 128, 1), jnp.float32)
    params = init_params(k_p)

    fwd = jax.jit(test_forward)
    logits, aux = fwd(params, x)
    logits = jax.block_until_ready(logits)
    aux = jax.block_until_ready(aux)
    assert logits.shape == (2, NUM_CLASSES), logits.shape
    assert aux.shape == (1,), aux.shape
    print("KERNEL_OK")
</pallas_src>

<mosaic_0001>
module attributes {stable_mosaic.version = 11 : i64} {
  func.func @_fused_forward_kernel(%arg0: i32, %arg1: memref<8x128xf32, #tpu.memory_space<vmem>>, %arg2: memref<8x128xf32, #tpu.memory_space<vmem>>, %arg3: memref<2688x512xbf16, #tpu.memory_space<vmem>>, %arg4: memref<8x512xf32, #tpu.memory_space<vmem>>, %arg5: memref<8x128xf32, #tpu.memory_space<vmem>>) attributes {dimension_semantics = [#tpu.dimension_semantics<parallel>], iteration_bounds = array<i64: 1>, scalar_prefetch = 0 : i64, scratch_operands = 0 : i64, tpu.core_type = #tpu.core_type<tc>, window_params = [{transform_indices = @transform_0, window_bounds = array<i64: 8, 128>}, {transform_indices = @transform_1, window_bounds = array<i64: 8, 128>}, {pipeline_mode = #tpu.pipeline_mode<synchronous>, transform_indices = @transform_2, window_bounds = array<i64: 2688, 512>}, {pipeline_mode = #tpu.pipeline_mode<synchronous>, transform_indices = @transform_3, window_bounds = array<i64: 8, 512>}, {transform_indices = @transform_4, window_bounds = array<i64: 8, 128>}]} {
    %c0 = arith.constant 0 : index
    %c0_0 = arith.constant 0 : index
    %0 = vector.load %arg3[%c0, %c0_0] : memref<2688x512xbf16, #tpu.memory_space<vmem>>, vector<128x512xbf16>
    %c0_1 = arith.constant 0 : index
    %c0_2 = arith.constant 0 : index
    %1 = vector.load %arg1[%c0_1, %c0_2] : memref<8x128xf32, #tpu.memory_space<vmem>>, vector<8x128xf32>
    %2 = arith.truncf %1 : vector<8x128xf32> to vector<8x128xbf16>
    %cst = arith.constant dense<0.000000e+00> : vector<8x512xf32>
    %3 = tpu.matmul %2, %0, %cst {dimension_numbers = #tpu.dot_dimension_numbers<[1], [0], [0], [1], [0, 0, 1, 1], [], []>} : vector<8x128xbf16>, vector<128x512xbf16>, vector<8x512xf32> -> vector<8x512xf32>
    %c0_3 = arith.constant 0 : index
    %c0_4 = arith.constant 0 : index
    %4 = vector.load %arg2[%c0_3, %c0_4] : memref<8x128xf32, #tpu.memory_space<vmem>>, vector<8x128xf32>
    %5 = arith.truncf %4 : vector<8x128xf32> to vector<8x128xbf16>
    %cst_5 = arith.constant dense<0.000000e+00> : vector<8x512xf32>
    %6 = tpu.matmul %5, %0, %cst_5 {dimension_numbers = #tpu.dot_dimension_numbers<[1], [0], [0], [1], [0, 0, 1, 1], [], []>} : vector<8x128xbf16>, vector<128x512xbf16>, vector<8x512xf32> -> vector<8x512xf32>
    %c0_6 = arith.constant 0 : index
    %c0_7 = arith.constant 0 : index
    %7 = vector.load %arg4[%c0_6, %c0_7] : memref<8x512xf32, #tpu.memory_space<vmem>>, vector<1x512xf32>
    %8 = vector.broadcast %7 : vector<1x512xf32> to vector<8x512xf32>
    %9 = arith.maximumf %3, %8 : vector<8x512xf32>
    %10 = vector.broadcast %7 : vector<1x512xf32> to vector<8x512xf32>
    %11 = arith.minimumf %3, %10 : vector<8x512xf32>
    %12 = arith.subf %11, %9 : vector<8x512xf32>
    %13 = math.exp %12 : vector<8x512xf32>
    %cst_8 = arith.constant 1.000000e+00 : f32
    %14 = vector.broadcast %cst_8 : f32 to vector<8x512xf32>
    %15 = arith.addf %14, %13 : vector<8x512xf32>
    %16 = math.log %15 : vector<8x512xf32>
    %17 = arith.addf %9, %16 : vector<8x512xf32>
    %c1 = arith.constant 1 : index
    %c0_9 = arith.constant 0 : index
    %18 = vector.load %arg4[%c1, %c0_9] : memref<8x512xf32, #tpu.memory_space<vmem>>, vector<1x512xf32>
    %19 = vector.broadcast %18 : vector<1x512xf32> to vector<8x512xf32>
    %20 = arith.mulf %17, %19 : vector<8x512xf32>
    %cst_10 = arith.constant dense<0.000000e+00> : vector<8xf32>
    %21 = vector.multi_reduction <add>, %20, %cst_10 [1] : vector<8x512xf32> to vector<8xf32>
    %22 = vector.shape_cast %21 : vector<8xf32> to vector<8x1xf32>
    %23 = vector.broadcast %18 : vector<1x512xf32> to vector<8x512xf32>
    %24 = arith.mulf %6, %23 : vector<8x512xf32>
    %cst_11 = arith.constant dense<0.000000e+00> : vector<8xf32>
    %25 = vector.multi_reduction <add>, %24, %cst_11 [1] : vector<8x512xf32> to vector<8xf32>
    %26 = vector.shape_cast %25 : vector<8xf32> to vector<8x1xf32>
    %27 = vector.broadcast %22 : vector<8x1xf32> to vector<8x512xf32>
    %28 = arith.subf %17, %27 : vector<8x512xf32>
    %29 = arith.mulf %28, %28 : vector<8x512xf32>
    %30 = vector.broadcast %26 : vector<8x1xf32> to vector<8x512xf32>
    %31 = arith.subf %6, %30 : vector<8x512xf32>
    %32 = arith.mulf %31, %31 : vector<8x512xf32>
    %33 = arith.addf %29, %32 : vector<8x512xf32>
    %34 = math.sqrt %33 : vector<8x512xf32>
    %35 = arith.truncf %34 : vector<8x512xf32> to vector<8x512xbf16>
    %c128 = arith.constant 128 : index
    %c0_12 = arith.constant 0 : index
    %36 = vector.load %arg3[%c128, %c0_12] : memref<2688x512xbf16, #tpu.memory_space<vmem>>, vector<512x512xbf16>
    %cst_13 = arith.constant dense<0.000000e+00> : vector<8x512xf32>
    %37 = tpu.matmul %35, %36, %cst_13 {dimension_numbers = #tpu.dot_dimension_numbers<[1], [0], [0], [1], [0, 0, 1, 1], [], []>} : vector<8x512xbf16>, vector<512x512xbf16>, vector<8x512xf32> -> vector<8x512xf32>
    %c640 = arith.constant 640 : index
    %c0_14 = arith.constant 0 : index
    %38 = vector.load %arg3[%c640, %c0_14] : memref<2688x512xbf16, #tpu.memory_space<vmem>>, vector<512x512xbf16>
    %cst_15 = arith.constant dense<0.000000e+00> : vector<8x512xf32>
    %39 = tpu.matmul %35, %38, %cst_15 {dimension_numbers = #tpu.dot_dimension_numbers<[1], [0], [0], [1], [0, 0, 1, 1], [], []>} : vector<8x512xbf16>, vector<512x512xbf16>, vector<8x512xf32> -> vector<8x512xf32>
    %40 = arith.maximumf %37, %39 : vector<8x512xf32>
    %c2 = arith.constant 2 : index
    %c0_16 = arith.constant 0 : index
    %41 = vector.load %arg4[%c2, %c0_16] : memref<8x512xf32, #tpu.memory_space<vmem>>, vector<1x512xf32>
    %42 = vector.broadcast %41 : vector<1x512xf32> to vector<8x512xf32>
    %43 = arith.addf %40, %42 : vector<8x512xf32>
    %cst_17 = arith.constant 0.000000e+00 : f32
    %44 = vector.broadcast %cst_17 : f32 to vector<8x512xf32>
    %45 = arith.maximumf %43, %44 : vector<8x512xf32>
    %46 = arith.truncf %45 : vector<8x512xf32> to vector<8x512xbf16>
    %c1152 = arith.constant 1152 : index
    %c0_18 = arith.constant 0 : index
    %47 = vector.load %arg3[%c1152, %c0_18] : memref<2688x512xbf16, #tpu.memory_space<vmem>>, vector<512x256xbf16>
    %cst_19 = arith.constant dense<0.000000e+00> : vector<8x256xf32>
    %48 = tpu.matmul %46, %47, %cst_19 {dimension_numbers = #tpu.dot_dimension_numbers<[1], [0], [0], [1], [0, 0, 1, 1], [], []>} : vector<8x512xbf16>, vector<512x256xbf16>, vector<8x256xf32> -> vector<8x256xf32>
    %c1664 = arith.constant 1664 : index
    %c0_20 = arith.constant 0 : index
    %49 = vector.load %arg3[%c1664, %c0_20] : memref<2688x512xbf16, #tpu.memory_space<vmem>>, vector<512x256xbf16>
    %cst_21 = arith.constant dense<0.000000e+00> : vector<8x256xf32>
    %50 = tpu.matmul %46, %49, %cst_21 {dimension_numbers = #tpu.dot_dimension_numbers<[1], [0], [0], [1], [0, 0, 1, 1], [], []>} : vector<8x512xbf16>, vector<512x256xbf16>, vector<8x256xf32> -> vector<8x256xf32>
    %51 = arith.maximumf %48, %50 : vector<8x256xf32>
    %c3 = arith.constant 3 : index
    %c0_22 = arith.constant 0 : index
    %52 = vector.load %arg4[%c3, %c0_22] : memref<8x512xf32, #tpu.memory_space<vmem>>, vector<1x256xf32>
    %53 = vector.broadcast %52 : vector<1x256xf32> to vector<8x256xf32>
    %54 = arith.addf %51, %53 : vector<8x256xf32>
    %cst_23 = arith.constant 0.000000e+00 : f32
    %55 = vector.broadcast %cst_23 : f32 to vector<8x256xf32>
    %56 = arith.maximumf %54, %55 : vector<8x256xf32>
    %57 = arith.truncf %56 : vector<8x256xf32> to vector<8x256xbf16>
    %c2176 = arith.constant 2176 : index
    %c0_24 = arith.constant 0 : index
    %58 = vector.load %arg3[%c2176, %c0_24] : memref<2688x512xbf16, #tpu.memory_space<vmem>>, vector<256x128xbf16>
    %cst_25 = arith.constant dense<0.000000e+00> : vector<8x128xf32>
    %59 = tpu.matmul %57, %58, %cst_25 {dimension_numbers = #tpu.dot_dimension_numbers<[1], [0], [0], [1], [0, 0, 1, 1], [], []>} : vector<8x256xbf16>, vector<256x128xbf16>, vector<8x128xf32> -> vector<8x128xf32>
    %c4 = arith.constant 4 : index
    %c0_26 = arith.constant 0 : index
    %60 = vector.load %arg4[%c4, %c0_26] : memref<8x512xf32, #tpu.memory_space<vmem>>, vector<1x128xf32>
    %61 = vector.broadcast %60 : vector<1x128xf32> to vector<8x128xf32>
    %62 = arith.addf %59, %61 : vector<8x128xf32>
    %cst_27 = arith.constant 0.000000e+00 : f32
    %63 = vector.broadcast %cst_27 : f32 to vector<8x128xf32>
    %64 = arith.maximumf %62, %63 : vector<8x128xf32>
    %65 = arith.truncf %64 : vector<8x128xf32> to vector<8x128xbf16>
    %c2432 = arith.constant 2432 : index
    %c0_28 = arith.constant 0 : index
    %66 = vector.load %arg3[%c2432, %c0_28] : memref<2688x512xbf16, #tpu.memory_space<vmem>>, vector<128x128xbf16>
    %cst_29 = arith.constant dense<0.000000e+00> : vector<8x128xf32>
    %67 = tpu.matmul %65, %66, %cst_29 {dimension_numbers = #tpu.dot_dimension_numbers<[1], [0], [0], [1], [0, 0, 1, 1], [], []>} : vector<8x128xbf16>, vector<128x128xbf16>, vector<8x128xf32> -> vector<8x128xf32>
    %c5 = arith.constant 5 : index
    %c0_30 = arith.constant 0 : index
    %68 = vector.load %arg4[%c5, %c0_30] : memref<8x512xf32, #tpu.memory_space<vmem>>, vector<1x128xf32>
    %69 = vector.broadcast %68 : vector<1x128xf32> to vector<8x128xf32>
    %70 = arith.addf %67, %69 : vector<8x128xf32>
    %cst_31 = arith.constant 0.000000e+00 : f32
    %71 = vector.broadcast %cst_31 : f32 to vector<8x128xf32>
    %72 = arith.maximumf %70, %71 : vector<8x128xf32>
    %73 = arith.truncf %72 : vector<8x128xf32> to vector<8x128xbf16>
    %c2560 = arith.constant 2560 : index
    %c0_32 = arith.constant 0 : index
    %74 = vector.load %arg3[%c2560, %c0_32] : memref<2688x512xbf16, #tpu.memory_space<vmem>>, vector<128x128xbf16>
    %cst_33 = arith.constant dense<0.000000e+00> : vector<8x128xf32>
    %75 = tpu.matmul %73, %74, %cst_33 {dimension_numbers = #tpu.dot_dimension_numbers<[1], [0], [0], [1], [0, 0, 1, 1], [], []>} : vector<8x128xbf16>, vector<128x128xbf16>, vector<8x128xf32> -> vector<8x128xf32>
    %c6 = arith.constant 6 : index
    %c0_34 = arith.constant 0 : index
    %76 = vector.load %arg4[%c6, %c0_34] : memref<8x512xf32, #tpu.memory_space<vmem>>, vector<1x128xf32>
    %77 = vector.broadcast %76 : vector<1x128xf32> to vector<8x128xf32>
    %78 = arith.addf %75, %77 : vector<8x128xf32>
    %c0_35 = arith.constant 0 : index
    %c0_36 = arith.constant 0 : index
    %79 = vector.load %arg5[%c0_35, %c0_36] : memref<8x128xf32, #tpu.memory_space<vmem>>, vector<8x128xf32>
    tpu.vector_store %arg5[%c0_35, %c0_36], %78 {strides = array<i32>} : memref<8x128xf32, #tpu.memory_space<vmem>>, vector<8x128xf32>,
    return
  }
  func.func @transform_0(%arg0: i32) -> (i32, i32) {
    %c0_i32 = arith.constant 0 : i32
    %c0_i32_0 = arith.constant 0 : i32
    return %arg0, %c0_i32 : i32, i32
  }
  func.func @transform_1(%arg0: i32) -> (i32, i32) {
    %c0_i32 = arith.constant 0 : i32
    %c0_i32_0 = arith.constant 0 : i32
    return %arg0, %c0_i32 : i32, i32
  }
  func.func @transform_2(%arg0: i32) -> (i32, i32) {
    %c0_i32 = arith.constant 0 : i32
    %c0_i32_0 = arith.constant 0 : i32
    %c0_i32_1 = arith.constant 0 : i32
    return %c0_i32, %c0_i32_0 : i32, i32
  }
  func.func @transform_3(%arg0: i32) -> (i32, i32) {
    %c0_i32 = arith.constant 0 : i32
    %c0_i32_0 = arith.constant 0 : i32
    %c0_i32_1 = arith.constant 0 : i32
    return %c0_i32, %c0_i32_0 : i32, i32
  }
  func.func @transform_4(%arg0: i32) -> (i32, i32) {
    %c0_i32 = arith.constant 0 : i32
    %c0_i32_0 = arith.constant 0 : i32
    return %arg0, %c0_i32 : i32, i32
  }
}

</mosaic_0001>

<bundles_post_ra>
// kernel: tile.28
= control target key start
LH: loop header
LB: loop body
LE: loop exit
PB: predicated region body
PF: predicated region fallthrough
CT: control target
= control target key end

     0   :  { %s40_s0 = inlined_call_operand.vmem [shape: f32[20], index: 0, kind: input, shape index: {}]   ;;  %s41_s1 = inlined_call_operand.vmem [shape: f32[25,20], index: 1, kind: output, shape index: {}]  }
   0x1   :  { %v4_v0 = vld [vmem:[%s40_s0] ss:$0 sm:$0xff] }
   0x2   :  { %5 = vst [vmem:[%s41_s1] sm:$0xff] %v4_v0  ;;  %12 = vst [vmem:[%s41_s1 + $0x8] sm:$0xff] %v4_v0 }
   0x3   :  { %13 = vst [vmem:[%s41_s1 + $0x10] sm:$0xff] %v4_v0  ;;  %14 = vst [vmem:[%s41_s1 + $0x18] sm:$0xff] %v4_v0 }

// kernel: tile.18
= control target key start
LH: loop header
LB: loop body
LE: loop exit
PB: predicated region body
PF: predicated region fallthrough
CT: control target
= control target key end

     0   :  { %s28_s0 = inlined_call_operand.vmem [shape: f32[40], index: 0, kind: input, shape index: {}]   ;;  %s29_s1 = inlined_call_operand.vmem [shape: f32[10,40], index: 1, kind: output, shape index: {}]  }
   0x1   :  { %v4_v0 = vld [vmem:[%s28_s0] ss:$0 sm:$0xff] }
   0x2   :  { %5 = vst [vmem:[%s29_s1] sm:$0xff] %v4_v0  ;;  %8 = vst [vmem:[%s29_s1 + $0x8] sm:$0xff] %v4_v0 }

// kernel: tile.23
= control target key start
LH: loop header
LB: loop body
LE: loop exit
PB: predicated region body
PF: predicated region fallthrough
CT: control target
= control target key end

     0   :  { %s22_s0 = inlined_call_operand.vmem [shape: f32[60], index: 0, kind: input, shape index: {}]   ;;  %s23_s1 = inlined_call_operand.vmem [shape: f32[3,60], index: 1, kind: output, shape index: {}]  }
   0x1   :  { %v4_v0 = vld [vmem:[%s22_s0] ss:$0 sm:$0xff] }
   0x2   :  { %5 = vst [vmem:[%s23_s1] sm:$0xf] %v4_v0 }

// kernel: test_forward.1
= control target key start
LH: loop header
LB: loop body
LE: loop exit
PB: predicated region body
PF: predicated region fallthrough
CT: control target
= control target key end

     0   :  { %v4987_v1 = vmov 0   ;;  %vm4989_vm8 = vmmov 0   ;;  %s6566_s2 = inlined_call_operand.vmem [shape: bf16[2688,512], index: 2, kind: input, shape index: {}]   ;;  %s6567_s0 = inlined_call_operand.vmem [shape: f32[8,128], index: 0, kind: input, shape index: {}]   ;;  %s6568_s1 = inlined_call_operand.vmem [shape: f32[8,128], index: 1, kind: input, shape index: {}]   ;;  %s6569_s3 = inlined_call_operand.vmem [shape: f32[8,512], index: 3, kind: input, shape index: {}]   ;;  %s6570_s4 = inlined_call_operand.vmem [shape: f32[8,128], index: 4, kind: output, shape index: {}]  }
   0x1   :  { %v5018_v0 = vld [vmem:[%s6566_s2 + $0xe4] ss:$16 sps:$4 sm:$0xff]   ;;  %244 = vmatprep.mubr.bf16.mxu0 %v4987_v1  ;;  %285 = vmatprep.mubr.bf16.mxu1 %v4987_v1  ;;  %v5025_v2 = vld [vmem:[%s6566_s2 + $0xec] ss:$16 sps:$4 sm:$0xff]   ;;  %v5031_v3 = vld [vmem:[%s6566_s2 + $0xe0] ss:$16 sps:$4 sm:$0xff]  }
   0x2   :  { %212 = vmatprep.subr.bf16.mxu0 %v5018_v0  ;;  %v5036_v4 = vld [vmem:[%s6566_s2 + $0xe8] ss:$16 sps:$4 sm:$0xff]   ;;  %253 = vmatprep.subr.bf16.mxu1 %v5025_v2  ;;  %v5042_v5 = vld [vmem:[%s6566_s2 + $0xc4] ss:$16 sps:$4 sm:$0xff]   ;;  %v5049_v6 = vld [vmem:[%s6566_s2 + $0xcc] ss:$16 sps:$4 sm:$0xff]  }
   0x3   :  { %213 = vmatpush1.bf16.msra.mxu0 %v5031_v3  ;;  %254 = vmatpush1.bf16.msra.mxu1 %v5036_v4  ;;  %v5054_v7 = vld [vmem:[%s6566_s2 + $0xc0] ss:$16 sps:$4 sm:$0xff]   ;;  %v5060_v8 = vld [vmem:[%s6566_s2 + $0xc8] ss:$16 sps:$4 sm:$0xff]   ;;  %v5066_v9 = vld [vmem:[%s6566_s2 + $0xa4] ss:$16 sps:$4 sm:$0xff]  }
   0x4   :  { %214 = vmatprep.subr.bf16.mxu0 %v5042_v5  ;;  %255 = vmatprep.subr.bf16.mxu1 %v5049_v6  ;;  %v5071_v10 = vld [vmem:[%s6566_s2 + $0xac] ss:$16 sps:$4 sm:$0xff]   ;;  %v5076_v11 = vld [vmem:[%s6566_s2 + $0xa0] ss:$16 sps:$4 sm:$0xff]   ;;  %v5081_v12 = vld [vmem:[%s6566_s2 + $0xa8] ss:$16 sps:$4 sm:$0xff]  }
   0x5   :  { %v4325_v13 = vld [vmem:[%s6566_s2 + $0x84] ss:$16 sps:$4 sm:$0xff]   ;;  %v4327_v14 = vld [vmem:[%s6566_s2 + $0x8c] ss:$16 sps:$4 sm:$0xff]   ;;  %v4329_v15 = vld [vmem:[%s6566_s2 + $0x80] ss:$16 sps:$4 sm:$0xff]  }
   0x6   :  { %v4330_v16 = vld [vmem:[%s6566_s2 + $0x88] ss:$16 sps:$4 sm:$0xff]   ;;  %v4331_v17 = vld [vmem:[%s6566_s2 + $0x64] ss:$16 sps:$4 sm:$0xff]   ;;  %v4333_v18 = vld [vmem:[%s6566_s2 + $0x6c] ss:$16 sps:$4 sm:$0xff]  }
   0x7   :  { %215 = vmatpush1.bf16.msra.mxu0 %v5054_v7  ;;  %256 = vmatpush1.bf16.msra.mxu1 %v5060_v8  ;;  %v4335_v19 = vld [vmem:[%s6566_s2 + $0x60] ss:$16 sps:$4 sm:$0xff]   ;;  %v4336_v20 = vld [vmem:[%s6566_s2 + $0x68] ss:$16 sps:$4 sm:$0xff]   ;;  %v4337_v21 = vld [vmem:[%s6566_s2 + $0x44] ss:$16 sps:$4 sm:$0xff]  }
   0x8   :  { %216 = vmatprep.subr.bf16.mxu0 %v5066_v9  ;;  %257 = vmatprep.subr.bf16.mxu1 %v5071_v10  ;;  %v4339_v22 = vld [vmem:[%s6566_s2 + $0x4c] ss:$16 sps:$4 sm:$0xff]   ;;  %v4341_v23 = vld [vmem:[%s6566_s2 + $0x40] ss:$16 sps:$4 sm:$0xff]   ;;  %v4342_v24 = vld [vmem:[%s6566_s2 + $0x48] ss:$16 sps:$4 sm:$0xff]  }
   0x9   :  { %v4343_v25 = vld [vmem:[%s6566_s2 + $0x24] ss:$16 sps:$4 sm:$0xff]   ;;  %v4345_v26 = vld [vmem:[%s6566_s2 + $0x2c] ss:$16 sps:$4 sm:$0xff]   ;;  %v4347_v27 = vld [vmem:[%s6566_s2 + $0x20] ss:$16 sps:$4 sm:$0xff]  }
   0xa   :  { %v4348_v28 = vld [vmem:[%s6566_s2 + $0x28] ss:$16 sps:$4 sm:$0xff]   ;;  %v4349_v29 = vld [vmem:[%s6566_s2 + $0x4] ss:$16 sps:$4 sm:$0xff]   ;;  %v4351_v30 = vld [vmem:[%s6566_s2 + $0xc] ss:$16 sps:$4 sm:$0xff]  }
   0xb   :  { %217 = vmatpush1.bf16.msra.mxu0 %v5076_v11  ;;  %258 = vmatpush1.bf16.msra.mxu1 %v5081_v12  ;;  %v4353_v31 = vld [vmem:[%s6566_s2] ss:$16 sps:$4 sm:$0xff]   ;;  %v4354_v32 = vld [vmem:[%s6566_s2 + $0x8] ss:$16 sps:$4 sm:$0xff]   ;;  %v4357_v38 = vld [vmem:[%s6566_s2 + $0x1e4] ss:$16 sps:$4 sm:$0xff]  }
   0xc   :  { %218 = vmatprep.subr.bf16.mxu0 %v4325_v13  ;;  %259 = vmatprep.subr.bf16.mxu1 %v4327_v14  ;;  %v50_v33 = vld [vmem:[%s6567_s0] sm:$0xff] }
   0xd   :  { %v51_v34 = vpack.c.bf16 %v50_v33, %v50_v33  ;;  %v294_v35 = vld [vmem:[%s6568_s1] sm:$0xff] }
   0xe   :  { %v295_v36 = vpack.c.bf16 %v294_v35, %v294_v35  ;;  %v4355_v37 = vld [vmem:[%s6566_s2 + $0x1e0] ss:$16 sps:$4 sm:$0xff]   ;;  %v4360_v40 = vld [vmem:[%s6566_s2 + $0x3e4] ss:$16 sps:$4 sm:$0xff]  }
   0xf   :  { %219 = vmatpush1.bf16.msra.mxu0 %v4329_v15  ;;  %260 = vmatpush1.bf16.msra.mxu1 %v4330_v16  ;;  %v4358_v39 = vld [vmem:[%s6566_s2 + $0x3e0] ss:$16 sps:$4 sm:$0xff]   ;;  %v4363_v41 = vld [vmem:[%s6566_s2 + $0x1c4] ss:$16 sps:$4 sm:$0xff]  }
  0x10   :  { %220 = vmatprep.subr.bf16.mxu0 %v4331_v17  ;;  %261 = vmatprep.subr.bf16.mxu1 %v4333_v18  ;;  %v4366_v42 = vld [vmem:[%s6566_s2 + $0x3c4] ss:$16 sps:$4 sm:$0xff]   ;;  %v4361_v43 = vld [vmem:[%s6566_s2 + $0x1c0] ss:$16 sps:$4 sm:$0xff]  }
  0x11   :  { %v4364_v44 = vld [vmem:[%s6566_s2 + $0x3c0] ss:$16 sps:$4 sm:$0xff]   ;;  %v4369_v45 = vld [vmem:[%s6566_s2 + $0x1a4] ss:$16 sps:$4 sm:$0xff]  }
  0x12   :  { %v4372_v46 = vld [vmem:[%s6566_s2 + $0x3a4] ss:$16 sps:$4 sm:$0xff]   ;;  %v4367_v47 = vld [vmem:[%s6566_s2 + $0x1a0] ss:$16 sps:$4 sm:$0xff]  }
  0x13   :  { %221 = vmatpush1.bf16.msra.mxu0 %v4335_v19  ;;  %262 = vmatpush1.bf16.msra.mxu1 %v4336_v20  ;;  %v4370_v48 = vld [vmem:[%s6566_s2 + $0x3a0] ss:$16 sps:$4 sm:$0xff]   ;;  %v4375_v49 = vld [vmem:[%s6566_s2 + $0x184] ss:$16 sps:$4 sm:$0xff]  }
  0x14   :  { %222 = vmatprep.subr.bf16.mxu0 %v4337_v21  ;;  %263 = vmatprep.subr.bf16.mxu1 %v4339_v22  ;;  %v4378_v50 = vld [vmem:[%s6566_s2 + $0x384] ss:$16 sps:$4 sm:$0xff]   ;;  %v4373_v51 = vld [vmem:[%s6566_s2 + $0x180] ss:$16 sps:$4 sm:$0xff]  }
  0x15   :  { %v4376_v52 = vld [vmem:[%s6566_s2 + $0x380] ss:$16 sps:$4 sm:$0xff]   ;;  %v4381_v53 = vld [vmem:[%s6566_s2 + $0x164] ss:$16 sps:$4 sm:$0xff]  }
  0x16   :  { %v4384_v54 = vld [vmem:[%s6566_s2 + $0x364] ss:$16 sps:$4 sm:$0xff]   ;;  %v4379_v55 = vld [vmem:[%s6566_s2 + $0x160] ss:$16 sps:$4 sm:$0xff]  }
  0x17   :  { %223 = vmatpush1.bf16.msra.mxu0 %v4341_v23  ;;  %264 = vmatpush1.bf16.msra.mxu1 %v4342_v24  ;;  %v4382_v56 = vld [vmem:[%s6566_s2 + $0x360] ss:$16 sps:$4 sm:$0xff]   ;;  %v4387_v57 = vld [vmem:[%s6566_s2 + $0x144] ss:$16 sps:$4 sm:$0xff]  }
  0x18   :  { %224 = vmatprep.subr.bf16.mxu0 %v4343_v25  ;;  %265 = vmatprep.subr.bf16.mxu1 %v4345_v26  ;;  %v4390_v58 = vld [vmem:[%s6566_s2 + $0x344] ss:$16 sps:$4 sm:$0xff]   ;;  %v4385_v59 = vld [vmem:[%s6566_s2 + $0x140] ss:$16 sps:$4 sm:$0xff]  }
  0x19   :  { %v4388_v60 = vld [vmem:[%s6566_s2 + $0x340] ss:$16 sps:$4 sm:$0xff]   ;;  %v4393_v61 = vld [vmem:[%s6566_s2 + $0x124] ss:$16 sps:$4 sm:$0xff]  }
  0x1a   :  { %v4396_v62 = vld [vmem:[%s6566_s2 + $0x324] ss:$16 sps:$4 sm:$0xff]   ;;  %v4391_v63 = vld [vmem:[%s6566_s2 + $0x120] ss:$16 sps:$4 sm:$0xff]  }
  0x1b   :  { %225 = vmatpush1.bf16.msra.mxu0 %v4347_v27  ;;  %266 = vmatpush1.bf16.msra.mxu1 %v4348_v28 }
  0x1c   :  { %226 = vmatprep.subr.bf16.mxu0 %v4349_v29  ;;  %267 = vmatprep.subr.bf16.mxu1 %v4351_v30 }
  0x1f   :  { %227 = vmatpush1.bf16.msra.mxu0 %v4353_v31  ;;  %268 = vmatpush1.bf16.msra.mxu1 %v4354_v32 }
  0x20   :  { %296 = vmatprep.subr.bf16.mxu0 %v5018_v0  ;;  %337 = vmatprep.subr.bf16.mxu1 %v5025_v2  ;;  %v4394_v0 = vld [vmem:[%s6566_s2 + $0x320] ss:$16 sps:$4 sm:$0xff]   ;;  %v4402_v2 = vld [vmem:[%s6566_s2 + $0x304] ss:$16 sps:$4 sm:$0xff]  }
  0x22   :  { %245 = vmatmul.mubr.bf16.vlgmr.msra.gmra.mxu0 %v51_v34  ;;  %286 = vmatmul.mubr.bf16.vlgmr.msra.gmra.mxu1 %v51_v34 }
  0x23   :  { %297 = vmatpush1.bf16.msra.mxu0 %v5031_v3  ;;  %338 = vmatpush1.bf16.msra.mxu1 %v5036_v4  ;;  %v4397_v3 = vld [vmem:[%s6566_s2 + $0x100] ss:$16 sps:$4 sm:$0xff]  }
  0x24   :  { %298 = vmatprep.subr.bf16.mxu0 %v5042_v5  ;;  %339 = vmatprep.subr.bf16.mxu1 %v5049_v6  ;;  %v4400_v4 = vld [vmem:[%s6566_s2 + $0x300] ss:$16 sps:$4 sm:$0xff]   ;;  %v4405_v5 = vld [vmem:[%s6566_s2 + $0x2e4] ss:$16 sps:$4 sm:$0xff]  }
  0x25   :  { %328 = vmatprep.mubr.bf16.mxu0 %v4987_v1  ;;  %369 = vmatprep.mubr.bf16.mxu1 %v4987_v1  ;;  %v4399_v1 = vld [vmem:[%s6566_s2 + $0x104] ss:$16 sps:$4 sm:$0xff]  }
  0x26   :  { %v4408_v6 = vld [vmem:[%s6566_s2 + $0x4e4] ss:$16 sps:$4 sm:$0xff]  }
  0x27   :  { %299 = vmatpush1.bf16.msra.mxu0 %v5054_v7  ;;  %340 = vmatpush1.bf16.msra.mxu1 %v5060_v8  ;;  %v4403_v7 = vld [vmem:[%s6566_s2 + $0x2e0] ss:$16 sps:$4 sm:$0xff]  }
  0x28   :  { %300 = vmatprep.subr.bf16.mxu0 %v5066_v9  ;;  %341 = vmatprep.subr.bf16.mxu1 %v5071_v10  ;;  %v4406_v8 = vld [vmem:[%s6566_s2 + $0x4e0] ss:$16 sps:$4 sm:$0xff]   ;;  %v380_v9 = vlaneseq }
  0x2a   :  { %v381_v10 = vshrl.u32 %v380_v9, 7 }
  0x2b   :  { %301 = vmatpush1.bf16.msra.mxu0 %v5076_v11  ;;  %342 = vmatpush1.bf16.msra.mxu1 %v5081_v12 }
  0x2c   :  { %302 = vmatprep.subr.bf16.mxu0 %v4325_v13  ;;  %343 = vmatprep.subr.bf16.mxu1 %v4327_v14  ;;  %v5277_v11 = vsub.s32 0, %v381_v10  ;;  %v5279_v12 = vsub.s32 2, %v381_v10  ;;  %v378_v13 = vld [vmem:[%s6569_s3] ss:$8 sm:$0xf]  ;;  %v5284_v14 = vsub.s32 1, %v381_v10 }
  0x2f   :  { %303 = vmatpush1.bf16.msra.mxu0 %v4329_v15  ;;  %344 = vmatpush1.bf16.msra.mxu1 %v4330_v16  ;;  %v5286_v15 = vsub.s32 3, %v381_v10  ;;  %v383_v16 = vrot.slane %v378_v13, %v5277_v11 }
  0x30   :  { %304 = vmatprep.subr.bf16.mxu0 %v4331_v17  ;;  %345 = vmatprep.subr.bf16.mxu1 %v4333_v18  ;;  %v391_v17 = vrot.slane %v378_v13, %v5279_v12  ;;  %v387_v18 = vrot.slane %v378_v13, %v5284_v14 }
  0x33   :  { %305 = vmatpush1.bf16.msra.mxu0 %v4335_v19  ;;  %346 = vmatpush1.bf16.msra.mxu1 %v4336_v20 }
  0x34   :  { %306 = vmatprep.subr.bf16.mxu0 %v4337_v21  ;;  %347 = vmatprep.subr.bf16.mxu1 %v4339_v22  ;;  %v395_v21 = vrot.slane %v378_v13, %v5286_v15 }
  0x37   :  { %307 = vmatpush1.bf16.msra.mxu0 %v4341_v23  ;;  %348 = vmatpush1.bf16.msra.mxu1 %v4342_v24 }
  0x38   :  { %308 = vmatprep.subr.bf16.mxu0 %v4343_v25  ;;  %349 = vmatprep.subr.bf16.mxu1 %v4345_v26 }
  0x3b   :  { %309 = vmatpush1.bf16.msra.mxu0 %v4347_v27  ;;  %350 = vmatpush1.bf16.msra.mxu1 %v4348_v28 }
  0x3c   :  { %310 = vmatprep.subr.bf16.mxu0 %v4349_v29  ;;  %351 = vmatprep.subr.bf16.mxu1 %v4351_v30 }
  0x3f   :  { %311 = vmatpush1.bf16.msra.mxu0 %v4353_v31  ;;  %352 = vmatpush1.bf16.msra.mxu1 %v4354_v32 }
  0x40   :  { %1297 = vmatprep.subr.bf16.mxu0 %v4357_v38  ;;  %1338 = vmatprep.subr.bf16.mxu1 %v4360_v40 }
  0x42   :  { %329 = vmatmul.mubr.bf16.vlgmr.msra.gmra.mxu0 %v295_v36  ;;  %370 = vmatmul.mubr.bf16.vlgmr.msra.gmra.mxu1 %v295_v36 }
  0x43   :  { %1298 = vmatpush1.bf16.msra.mxu0 %v4355_v37  ;;  %1339 = vmatpush1.bf16.msra.mxu1 %v4358_v39 }
  0x44   :  { %1299 = vmatprep.subr.bf16.mxu0 %v4363_v41  ;;  %1340 = vmatprep.subr.bf16.mxu1 %v4366_v42 }
  0x47   :  { %1300 = vmatpush1.bf16.msra.mxu0 %v4361_v43  ;;  %1341 = vmatpush1.bf16.msra.mxu1 %v4364_v44 }
  0x48   :  { %1301 = vmatprep.subr.bf16.mxu0 %v4369_v45  ;;  %1342 = vmatprep.subr.bf16.mxu1 %v4372_v46 }
  0x4b   :  { %1302 = vmatpush1.bf16.msra.mxu0 %v4367_v47  ;;  %1343 = vmatpush1.bf16.msra.mxu1 %v4370_v48 }
  0x4c   :  { %1303 = vmatprep.subr.bf16.mxu0 %v4375_v49  ;;  %1344 = vmatprep.subr.bf16.mxu1 %v4378_v50 }
  0x4f   :  { %1304 = vmatpush1.bf16.msra.mxu0 %v4373_v51  ;;  %1345 = vmatpush1.bf16.msra.mxu1 %v4376_v52 }
  0x50   :  { %1305 = vmatprep.subr.bf16.mxu0 %v4381_v53  ;;  %1346 = vmatprep.subr.bf16.mxu1 %v4384_v54 }
  0x53   :  { %1306 = vmatpush1.bf16.msra.mxu0 %v4379_v55  ;;  %1347 = vmatpush1.bf16.msra.mxu1 %v4382_v56 }
  0x54   :  { %1307 = vmatprep.subr.bf16.mxu0 %v4387_v57  ;;  %1348 = vmatprep.subr.bf16.mxu1 %v4390_v58  ;;  %v3805_v57 = vld [vmem:[%s6569_s3 + $0x1] ss:$8 sm:$0xf] }
  0x57   :  { %1308 = vmatpush1.bf16.msra.mxu0 %v4385_v59  ;;  %1349 = vmatpush1.bf16.msra.mxu1 %v4388_v60 }
  0x58   :  { %1309 = vmatprep.subr.bf16.mxu0 %v4393_v61  ;;  %1350 = vmatprep.subr.bf16.mxu1 %v4396_v62 }
  0x5b   :  { %1310 = vmatpush1.bf16.msra.mxu0 %v4391_v63  ;;  %1351 = vmatpush1.bf16.msra.mxu1 %v4394_v0 }
  0x5c   :  { %1311 = vmatprep.subr.bf16.mxu0 %v4399_v1  ;;  %1352 = vmatprep.subr.bf16.mxu1 %v4402_v2 }
  0x5f   :  { %1312 = vmatpush1.bf16.msra.mxu0 %v4397_v3  ;;  %1353 = vmatpush1.bf16.msra.mxu1 %v4400_v4 }
  0x60   :  { %1313 = vmatprep.subr.bf16.mxu0 %v4405_v5  ;;  %1354 = vmatprep.subr.bf16.mxu1 %v4408_v6  ;;  %v442_v5 = vrot.slane %v3805_v57, %v5277_v11  ;;  %v446_v6 = vrot.slane %v3805_v57, %v5284_v14 }
  0x63   :  { %1314 = vmatpush2.bf16.msra.mxu0 %v4403_v7  ;;  %1355 = vmatpush2.bf16.msra.mxu1 %v4406_v8  ;;  %v450_v8 = vrot.slane %v3805_v57, %v5279_v12 }
  0xe2   :  { %v246_v19 = vpop.f32.mrf.mxu0  ;;  %v287_v20 = vpop.f32.mrf.mxu1 }
  0xe3   :  { %v400_v22 = vmax.f32 %v246_v19, %v383_v16  ;;  %v404_v23 = vmin.f32 %v246_v19, %v383_v16  ;;  %v402_v24 = vmax.f32 %v287_v20, %v391_v17  ;;  %v406_v25 = vmin.f32 %v287_v20, %v391_v17 }
  0xe4   :  { %v248_v26 = vpop.f32.mrf.mxu0  ;;  %v289_v27 = vpop.f32.mrf.mxu1  ;;  %v454_v20 = vrot.slane %v3805_v57, %v5286_v15  ;;  %v4439_v57 = vld [vmem:[%s6566_s2 + $0x220] ss:$16 sps:$4 sm:$0xff]  }
  0xe5   :  { %v408_v28 = vsub.f32 %v404_v23, %v400_v22  ;;  %v410_v29 = vsub.f32 %v406_v25, %v402_v24  ;;  %v401_v30 = vmax.f32 %v248_v26, %v387_v18  ;;  %v405_v31 = vmin.f32 %v248_v26, %v387_v18 }
  0xe6   :  { %v403_v32 = vmax.f32 %v289_v27, %v395_v21  ;;  %v407_v33 = vmin.f32 %v289_v27, %v395_v21  ;;  %v250_v34 = vpop.f32.mrf.mxu0  ;;  %v291_v35 = vpop.f32.mrf.mxu1 }
  0xe7   :  { %v412_v36 = vmul.f32 1.442695, %v408_v28  ;;  %v416_v37 = vmul.f32 1.442695, %v410_v29  ;;  %v409_v38 = vsub.f32 %v405_v31, %v401_v30  ;;  %v4411_v31 = vld [vmem:[%s6566_s2 + $0x2c4] ss:$16 sps:$4 sm:$0xff]  }
  0xe8   :  { %v411_v39 = vsub.f32 %v407_v33, %v403_v32  ;;  %v251_v40 = vpop.f32.mrf.mxu0  ;;  %v292_v41 = vpop.f32.mrf.mxu1  ;;  %v4409_v33 = vld [vmem:[%s6566_s2 + $0x2c0] ss:$16 sps:$4 sm:$0xff]   ;;  %1315 = vmatprep.subr.bf16.mxu0 %v4411_v31  ;;  %v4417_v35 = vld [vmem:[%s6566_s2 + $0x2a4] ss:$16 sps:$4 sm:$0xff]  }
  0xe9   :  { %4963 = vpow2.f32 %v412_v36  ;;  %v414_v42 = vmul.f32 1.442695, %v409_v38  ;;  %v4412_v34 = vld [vmem:[%s6566_s2 + $0x4c0] ss:$16 sps:$4 sm:$0xff]   ;;  %1316 = vmatpush2.bf16.msra.mxu0 %v4409_v33  ;;  %v4420_v36 = vld [vmem:[%s6566_s2 + $0x4a4] ss:$16 sps:$4 sm:$0xff]  }
  0xea   :  { %4965 = vpow2.f32 %v416_v37  ;;  %v418_v43 = vmul.f32 1.442695, %v411_v39  ;;  %v4415_v37 = vld [vmem:[%s6566_s2 + $0x2a0] ss:$16 sps:$4 sm:$0xff]   ;;  %1317 = vmatprep.subr.bf16.mxu0 %v4417_v35  ;;  %v4423_v39 = vld [vmem:[%s6566_s2 + $0x284] ss:$16 sps:$4 sm:$0xff]  }
  0xeb   :  { %4967 = vpow2.f32 %v414_v42  ;;  %v4418_v38 = vld [vmem:[%s6566_s2 + $0x4a0] ss:$16 sps:$4 sm:$0xff]   ;;  %v4426_v40 = vld [vmem:[%s6566_s2 + $0x484] ss:$16 sps:$4 sm:$0xff]  }
  0xec   :  { %4969 = vpow2.f32 %v418_v43  ;;  %v4421_v41 = vld [vmem:[%s6566_s2 + $0x280] ss:$16 sps:$4 sm:$0xff]   ;;  %v4429_v43 = vld [vmem:[%s6566_s2 + $0x264] ss:$16 sps:$4 sm:$0xff]  }
  0xed   :  { %1318 = vmatpush2.bf16.msra.mxu0 %v4415_v37  ;;  %v4424_v42 = vld [vmem:[%s6566_s2 + $0x480] ss:$16 sps:$4 sm:$0xff]  }
  0xee   :  { %1319 = vmatprep.subr.bf16.mxu0 %v4423_v39 }
  0xf1   :  { %1320 = vmatpush2.bf16.msra.mxu0 %v4421_v41 }
  0xf2   :  { %1321 = vmatprep.subr.bf16.mxu0 %v4429_v43  ;;  %v4451_v43 = vld [vmem:[%s6566_s2 + $0x1e8] ss:$16 sps:$4 sm:$0xff]  }
  0xf6   :  { %v4964_v44 = vpop.eup %4963 }
  0xf7   :  { %v4966_v45 = vpop.eup %4965  ;;  %v420_v46 = vadd.f32 1.0, %v4964_v44  ;;  %v4427_v44 = vld [vmem:[%s6566_s2 + $0x260] ss:$16 sps:$4 sm:$0xff]  }
  0xf8   :  { %v4968_v47 = vpop.eup %4967  ;;  %v422_v48 = vadd.f32 1.0, %v4966_v45  ;;  %v4430_v45 = vld [vmem:[%s6566_s2 + $0x460] ss:$16 sps:$4 sm:$0xff]   ;;  %1322 = vmatpush2.bf16.msra.mxu0 %v4427_v44 }
  0xf9   :  { %v4970_v49 = vpop.eup %4969  ;;  %4971 = vlog2.f32 %v420_v46  ;;  %v421_v50 = vadd.f32 1.0, %v4968_v47  ;;  %v4432_v46 = vld [vmem:[%s6566_s2 + $0x464] ss:$16 sps:$4 sm:$0xff]  }
  0xfa   :  { %4973 = vlog2.f32 %v422_v48  ;;  %v423_v51 = vadd.f32 1.0, %v4970_v49  ;;  %v4435_v47 = vld [vmem:[%s6566_s2 + $0x244] ss:$16 sps:$4 sm:$0xff]   ;;  %v4433_v49 = vld [vmem:[%s6566_s2 + $0x240] ss:$16 sps:$4 sm:$0xff]  }
  0xfb   :  { %4975 = vlog2.f32 %v421_v50  ;;  %v4438_v48 = vld [vmem:[%s6566_s2 + $0x444] ss:$16 sps:$4 sm:$0xff]   ;;  %v4436_v50 = vld [vmem:[%s6566_s2 + $0x440] ss:$16 sps:$4 sm:$0xff]   ;;  %1323 = vmatprep.subr.bf16.mxu0 %v4435_v47 }
  0xfc   :  { %4977 = vlog2.f32 %v423_v51  ;;  %v4441_v51 = vld [vmem:[%s6566_s2 + $0x224] ss:$16 sps:$4 sm:$0xff]   ;;  %1324 = vmatpush2.bf16.msra.mxu0 %v4433_v49  ;;  %v4459_v49 = vld [vmem:[%s6566_s2 + $0x1cc] ss:$16 sps:$4 sm:$0xff]  }
  0xfd   :  { %1325 = vmatprep.subr.bf16.mxu0 %v4441_v51  ;;  %v4457_v51 = vld [vmem:[%s6566_s2 + $0x1c8] ss:$16 sps:$4 sm:$0xff]  }
 0x100   :  { %1326 = vmatpush2.bf16.msra.mxu0 %v4439_v57  ;;  %v4460_v57 = vld [vmem:[%s6566_s2 + $0x3c8] ss:$16 sps:$4 sm:$0xff]  }
 0x102   :  { %v5292_v52 = vpop.f32.mrf.mxu0  ;;  %v5294_v53 = vpop.f32.mrf.mxu1 }
 0x103   :  { %v468_v13 = vmul.f32 %v442_v5, %v5292_v52 }
 0x104   :  { %v5296_v54 = vpop.f32.mrf.mxu0  ;;  %v5298_v55 = vpop.f32.mrf.mxu1 }
 0x105   :  { %v469_v16 = vmul.f32 %v446_v6, %v5296_v54  ;;  %v471_v27 = vmul.f32 %v454_v20, %v5298_v55 }
 0x106   :  { %v4972_v56 = vpop.eup %4971  ;;  %v334_v58 = vpop.f32.mrf.mxu0 }
 0x107   :  { %v375_v59 = vpop.f32.mrf.mxu1  ;;  %v4974_v60 = vpop.eup %4973  ;;  %v425_v61 = vmul.f32 0.6931472, %v4972_v56  ;;  %v472_v21 = vadd.f32 %v469_v16, %v468_v13  ;;  %v4444_v56 = vld [vmem:[%s6566_s2 + $0x424] ss:$16 sps:$4 sm:$0xff]   ;;  %v4442_v58 = vld [vmem:[%s6566_s2 + $0x420] ss:$16 sps:$4 sm:$0xff]  }
 0x108   :  { %v4976_v62 = vpop.eup %4975  ;;  %v429_v63 = vmul.f32 0.6931472, %v4974_v60  ;;  %v335_v0 = vpop.f32.mrf.mxu0  ;;  %v4447_v59 = vld [vmem:[%s6566_s2 + $0x204] ss:$16 sps:$4 sm:$0xff]  }
 0x109   :  { %v376_v1 = vpop.f32.mrf.mxu1  ;;  %v4978_v2 = vpop.eup %4977  ;;  %v5303_v3 = vadd.f32 %v425_v61, %v400_v22  ;;  %v427_v4 = vmul.f32 0.6931472, %v4976_v62  ;;  %v470_v22 = vmul.f32 %v450_v8, %v5294_v53  ;;  %v4450_v60 = vld [vmem:[%s6566_s2 + $0x404] ss:$16 sps:$4 sm:$0xff]   ;;  %v4445_v61 = vld [vmem:[%s6566_s2 + $0x200] ss:$16 sps:$4 sm:$0xff]   ;;  %1327 = vmatprep.subr.bf16.mxu0 %v4447_v59 }
 0x10a   :  { %v431_v7 = vmul.f32 0.6931472, %v4978_v2  ;;  %v5308_v9 = vadd.f32 %v429_v63, %v402_v24  ;;  %v4448_v62 = vld [vmem:[%s6566_s2 + $0x400] ss:$16 sps:$4 sm:$0xff]   ;;  %1328 = vmatpush2.bf16.msra.mxu0 %v4445_v61  ;;  %v4453_v63 = vld [vmem:[%s6566_s2 + $0x1ec] ss:$16 sps:$4 sm:$0xff]  }
 0x10b   :  { %v5310_v10 = vadd.f32 %v427_v4, %v401_v30  ;;  %v459_v18 = vmul.f32 %v442_v5, %v5303_v3  ;;  %v473_v29 = vadd.f32 %v472_v21, %v470_v22  ;;  %v4456_v0 = vld [vmem:[%s6566_s2 + $0x3ec] ss:$16 sps:$4 sm:$0xff]   ;;  %1379 = vmatprep.subr.bf16.mxu0 %v4453_v63  ;;  %v4463_v59 = vld [vmem:[%s6566_s2 + $0x1a8] ss:$16 sps:$4 sm:$0xff]  }
 0x10c   :  { %v5314_v17 = vadd.f32 %v431_v7, %v403_v32  ;;  %v461_v23 = vmul.f32 %v450_v8, %v5308_v9  ;;  %v4414_v32 = vld [vmem:[%s6566_s2 + $0x4c4] ss:$16 sps:$4 sm:$0xff]   ;;  %v4466_v61 = vld [vmem:[%s6566_s2 + $0x3a8] ss:$16 sps:$4 sm:$0xff]  }
 0x10d   :  { %v460_v19 = vmul.f32 %v446_v6, %v5310_v10  ;;  %v474_v30 = vadd.f32 %v473_v29, %v471_v27  ;;  %1356 = vmatprep.subr.bf16.mxu1 %v4414_v32  ;;  %v4469_v63 = vld [vmem:[%s6566_s2 + $0x188] ss:$16 sps:$4 sm:$0xff]  }
 0x10e   :  { %v462_v25 = vmul.f32 %v454_v20, %v5314_v17  ;;  %1357 = vmatpush2.bf16.msra.mxu1 %v4412_v34 }
 0x10f   :  { %v463_v24 = vadd.f32 %v460_v19, %v459_v18  ;;  %1358 = vmatprep.subr.bf16.mxu1 %v4420_v36 }
 0x111   :  { %v464_v26 = vadd.f32 %v463_v24, %v461_v23 }
 0x112   :  { %1359 = vmatpush2.bf16.msra.mxu1 %v4418_v38 }
 0x113   :  { %v465_v28 = vadd.f32 %v464_v26, %v462_v25  ;;  %1360 = vmatprep.subr.bf16.mxu1 %v4426_v40 }
 0x115   :  { %466 = vadd.xlane.f32.xlu0 %v465_v28 }
 0x116   :  { %1361 = vmatpush2.bf16.msra.mxu1 %v4424_v42 }
 0x117   :  { %1362 = vmatprep.subr.bf16.mxu1 %v4432_v46 }
 0x119   :  { %475 = vadd.xlane.f32.xlu0 %v474_v30 }
 0x11a   :  { %1363 = vmatpush2.bf16.msra.mxu1 %v4430_v45 }
 0x11b   :  { %1364 = vmatprep.subr.bf16.mxu1 %v4438_v48  ;;  %v4454_v48 = vld [vmem:[%s6566_s2 + $0x3e8] ss:$16 sps:$4 sm:$0xff]  }
 0x11e   :  { %1365 = vmatpush2.bf16.msra.mxu1 %v4436_v50  ;;  %v4462_v50 = vld [vmem:[%s6566_s2 + $0x3cc] ss:$16 sps:$4 sm:$0xff]  }
 0x11f   :  { %1366 = vmatprep.subr.bf16.mxu1 %v4444_v56  ;;  %v4465_v56 = vld [vmem:[%s6566_s2 + $0x1ac] ss:$16 sps:$4 sm:$0xff]  }
 0x122   :  { %1367 = vmatpush2.bf16.msra.mxu1 %v4442_v58  ;;  %v4468_v58 = vld [vmem:[%s6566_s2 + $0x3ac] ss:$16 sps:$4 sm:$0xff]  }
 0x123   :  { %1368 = vmatprep.subr.bf16.mxu1 %v4450_v60  ;;  %v4471_v60 = vld [vmem:[%s6566_s2 + $0x18c] ss:$16 sps:$4 sm:$0xff]  }
 0x126   :  { %1369 = vmatpush2.bf16.msra.mxu1 %v4448_v62  ;;  %v4474_v62 = vld [vmem:[%s6566_s2 + $0x38c] ss:$16 sps:$4 sm:$0xff]  }
 0x127   :  { %1420 = vmatprep.subr.bf16.mxu1 %v4456_v0  ;;  %v4477_v0 = vld [vmem:[%s6566_s2 + $0x16c] ss:$16 sps:$4 sm:$0xff]  }
 0x19e   :  { %v467_v1 = vpop.xlane.xlu0 %466 }
 0x19f   :  { %v477_v2 = vsub.f32 %v5303_v3, %v467_v1  ;;  %v478_v4 = vsub.f32 %v5310_v10, %v467_v1  ;;  %v479_v5 = vsub.f32 %v5308_v9, %v467_v1  ;;  %v480_v6 = vsub.f32 %v5314_v17, %v467_v1  ;;  %v4472_v1 = vld [vmem:[%s6566_s2 + $0x388] ss:$16 sps:$4 sm:$0xff]  }
 0x1a1   :  { %v481_v19 = vmul.f32 %v477_v2, %v477_v2  ;;  %v482_v20 = vmul.f32 %v478_v4, %v478_v4  ;;  %v483_v21 = vmul.f32 %v479_v5, %v479_v5  ;;  %v484_v24 = vmul.f32 %v480_v6, %v480_v6  ;;  %v4480_v2 = vld [vmem:[%s6566_s2 + $0x36c] ss:$16 sps:$4 sm:$0xff]   ;;  %v4475_v4 = vld [vmem:[%s6566_s2 + $0x168] ss:$16 sps:$4 sm:$0xff]  }
 0x1a2   :  { %v476_v7 = vpop.xlane.xlu0 %475  ;;  %v4483_v5 = vld [vmem:[%s6566_s2 + $0x14c] ss:$16 sps:$4 sm:$0xff]   ;;  %v4478_v6 = vld [vmem:[%s6566_s2 + $0x368] ss:$16 sps:$4 sm:$0xff]  }
 0x1a3   :  { %v485_v8 = vsub.f32 %v5292_v52, %v476_v7  ;;  %v486_v13 = vsub.f32 %v5296_v54, %v476_v7  ;;  %v487_v16 = vsub.f32 %v5294_v53, %v476_v7  ;;  %v488_v18 = vsub.f32 %v5298_v55, %v476_v7  ;;  %v4486_v7 = vld [vmem:[%s6566_s2 + $0x34c] ss:$16 sps:$4 sm:$0xff]  }
 0x1a5   :  { %v489_v22 = vmul.f32 %v485_v8, %v485_v8  ;;  %v490_v3 = vmul.f32 %v486_v13, %v486_v13  ;;  %v491_v23 = vmul.f32 %v487_v16, %v487_v16  ;;  %v492_v10 = vmul.f32 %v488_v18, %v488_v18  ;;  %v4481_v8 = vld [vmem:[%s6566_s2 + $0x148] ss:$16 sps:$4 sm:$0xff]   ;;  %v4489_v13 = vld [vmem:[%s6566_s2 + $0x12c] ss:$16 sps:$4 sm:$0xff]  }
 0x1a6   :  { %v4484_v16 = vld [vmem:[%s6566_s2 + $0x348] ss:$16 sps:$4 sm:$0xff]   ;;  %v4492_v18 = vld [vmem:[%s6566_s2 + $0x32c] ss:$16 sps:$4 sm:$0xff]  }
 0x1a7   :  { %v493_v9 = vadd.f32 %v489_v22, %v481_v19  ;;  %v494_v25 = vadd.f32 %v490_v3, %v482_v20  ;;  %v495_v17 = vadd.f32 %v491_v23, %v483_v21  ;;  %v496_v26 = vadd.f32 %v492_v10, %v484_v24  ;;  %v4487_v19 = vld [vmem:[%s6566_s2 + $0x128] ss:$16 sps:$4 sm:$0xff]   ;;  %v4495_v20 = vld [vmem:[%s6566_s2 + $0x10c] ss:$16 sps:$4 sm:$0xff]  }
 0x1a8   :  { %v4490_v21 = vld [vmem:[%s6566_s2 + $0x328] ss:$16 sps:$4 sm:$0xff]   ;;  %v4498_v22 = vld [vmem:[%s6566_s2 + $0x30c] ss:$16 sps:$4 sm:$0xff]  }
 0x1a9   :  { %4979 = vrsqrt.f32 %v493_v9  ;;  %vm506_vm0 = vcmp.eq.f32.partialorder %v494_v25, inf  ;;  %vm508_vm1 = vcmp.eq.f32.partialorder %v494_v25, 0.0  ;;  %v509_v54 = vand.u32 2147483648, %v494_v25  ;;  %v4493_v3 = vld [vmem:[%s6566_s2 + $0x108] ss:$16 sps:$4 sm:$0xff]  }
 0x1aa   :  { %4981 = vrsqrt.f32 %v494_v25  ;;  %vm520_vm2 = vcmp.eq.f32.partialorder %v496_v26, inf  ;;  %v523_v29 = vand.u32 2147483648, %v496_v26  ;;  %vm499_vm3 = vcmp.eq.f32.partialorder %v493_v9, inf  ;;  %v4501_v23 = vld [vmem:[%s6566_s2 + $0x2ec] ss:$16 sps:$4 sm:$0xff]  }
 0x1ab   :  { %4983 = vrsqrt.f32 %v495_v17  ;;  %v502_v30 = vand.u32 2147483648, %v493_v9  ;;  %vm501_vm4 = vcmp.eq.f32.partialorder %v493_v9, 0.0  ;;  %vm513_vm5 = vcmp.eq.f32.partialorder %v495_v17, inf  ;;  %v4496_v10 = vld [vmem:[%s6566_s2 + $0x308] ss:$16 sps:$4 sm:$0xff]  }
 0x1ac   :  { %4985 = vrsqrt.f32 %v496_v26  ;;  %v516_v37 = vand.u32 2147483648, %v495_v17  ;;  %vm515_vm6 = vcmp.eq.f32.partialorder %v495_v17, 0.0  ;;  %vm522_vm7 = vcmp.eq.f32.partialorder %v496_v26, 0.0  ;;  %v4504_v24 = vld [vmem:[%s6566_s2 + $0x4ec] ss:$16 sps:$4 sm:$0xff]  }
 0x1b6   :  { %v4980_v52 = vpop.eup %4979 }
 0x1b7   :  { %v4982_v53 = vpop.eup %4981  ;;  %v498_v55 = vmul.f32 %v4980_v52, %v493_v9  ;;  %v4505_v52 = vld [vmem:[%s6566_s2 + $0x2c8] ss:$16 sps:$4 sm:$0xff]  }
 0x1b8   :  { %v4984_v27 = vpop.eup %4983  ;;  %v505_v28 = vmul.f32 %v4982_v53, %v494_v25  ;;  %v4513_v53 = vld [vmem:[%s6566_s2 + $0x2ac] ss:$16 sps:$4 sm:$0xff]  }
 0x1b9   :  { %v4986_v31 = vpop.eup %4985  ;;  %v500_v32 = vsel %vm499_vm3, %v493_v9, %v498_v55  ;;  %v512_v33 = vmul.f32 %v4984_v27, %v495_v17  ;;  %v4499_v9 = vld [vmem:[%s6566_s2 + $0x2e8] ss:$16 sps:$4 sm:$0xff]   ;;  %v4516_v55 = vld [vmem:[%s6566_s2 + $0x4ac] ss:$16 sps:$4 sm:$0xff]  }
 0x1ba   :  { %v507_v34 = vsel %vm506_vm0, %v494_v25, %v505_v28  ;;  %v519_v35 = vmul.f32 %v4986_v31, %v496_v26  ;;  %v503_v36 = vsel %vm501_vm4, %v502_v30, %v500_v32  ;;  %v4507_v25 = vld [vmem:[%s6566_s2 + $0x2cc] ss:$16 sps:$4 sm:$0xff]   ;;  %v4511_v27 = vld [vmem:[%s6566_s2 + $0x2a8] ss:$16 sps:$4 sm:$0xff]  }
 0x1bb   :  { %v510_v38 = vsel %vm508_vm1, %v509_v54, %v507_v34  ;;  %v5423_v39 = vpack.c.bf16 %v503_v36, %v503_v36  ;;  %v514_v40 = vsel %vm513_vm5, %v495_v17, %v512_v33  ;;  %v4502_v17 = vld [vmem:[%s6566_s2 + $0x4e8] ss:$16 sps:$4 sm:$0xff]   ;;  %v4519_v28 = vld [vmem:[%s6566_s2 + $0x28c] ss:$16 sps:$4 sm:$0xff]  }
 0x1bc   :  { %v5425_v41 = vpack.c.bf16 %v510_v38, %v510_v38  ;;  %v521_v42 = vsel %vm520_vm2, %v496_v26, %v519_v35  ;;  %v517_v44 = vsel %vm515_vm6, %v516_v37, %v514_v40  ;;  %v4510_v26 = vld [vmem:[%s6566_s2 + $0x4cc] ss:$16 sps:$4 sm:$0xff]   ;;  %v4508_v54 = vld [vmem:[%s6566_s2 + $0x4c8] ss:$16 sps:$4 sm:$0xff]  }
 0x1bd   :  { %v524_v45 = vsel %vm522_vm7, %v523_v29, %v521_v42  ;;  %v5431_v46 = vpack.c.bf16 %v517_v44, %v517_v44  ;;  %v4514_v29 = vld [vmem:[%s6566_s2 + $0x4a8] ss:$16 sps:$4 sm:$0xff]   ;;  %v4522_v30 = vld [vmem:[%s6566_s2 + $0x48c] ss:$16 sps:$4 sm:$0xff]  }
 0x1be   :  { %1329 = vmatprep.mubr.bf16.mxu0 %v5425_v41  ;;  %v5434_v47 = vpack.c.bf16 %v524_v45, %v524_v45  ;;  %v4517_v31 = vld [vmem:[%s6566_s2 + $0x288] ss:$16 sps:$4 sm:$0xff]   ;;  %v4525_v32 = vld [vmem:[%s6566_s2 + $0x26c] ss:$16 sps:$4 sm:$0xff]  }
 0x1bf   :  { %1330 = vmatmul.mubr.bf16.vlgmr.msra.gmra.mxu0 %v5423_v39  ;;  %v4520_v33 = vld [vmem:[%s6566_s2 + $0x488] ss:$16 sps:$4 sm:$0xff]   ;;  %v4528_v34 = vld [vmem:[%s6566_s2 + $0x46c] ss:$16 sps:$4 sm:$0xff]  }
 0x1c0   :  { %1370 = vmatprep.mubr.bf16.mxu1 %v5434_v47  ;;  %1380 = vmatpush1.bf16.msra.mxu0 %v4451_v43  ;;  %v4523_v35 = vld [vmem:[%s6566_s2 + $0x268] ss:$16 sps:$4 sm:$0xff]   ;;  %v4531_v36 = vld [vmem:[%s6566_s2 + $0x24c] ss:$16 sps:$4 sm:$0xff]  }
 0x1c1   :  { %1371 = vmatmul.mubr.bf16.vlgmr.msra.gmra.mxu1 %v5431_v46  ;;  %1411 = vmatprep.mubr.bf16.mxu0 %v5425_v41  ;;  %v4526_v37 = vld [vmem:[%s6566_s2 + $0x468] ss:$16 sps:$4 sm:$0xff]   ;;  %v4534_v38 = vld [vmem:[%s6566_s2 + $0x44c] ss:$16 sps:$4 sm:$0xff]  }
 0x1c2   :  { %1421 = vmatpush1.bf16.msra.mxu1 %v4454_v48  ;;  %1452 = vmatprep.mubr.bf16.mxu1 %v5434_v47  ;;  %v4529_v40 = vld [vmem:[%s6566_s2 + $0x248] ss:$16 sps:$4 sm:$0xff]   ;;  %v4537_v42 = vld [vmem:[%s6566_s2 + $0x22c] ss:$16 sps:$4 sm:$0xff]  }
 0x1c3   :  { %1381 = vmatprep.subr.bf16.mxu0 %v4459_v49  ;;  %1422 = vmatprep.subr.bf16.mxu1 %v4462_v50  ;;  %v4532_v43 = vld [vmem:[%s6566_s2 + $0x448] ss:$16 sps:$4 sm:$0xff]   ;;  %v4540_v44 = vld [vmem:[%s6566_s2 + $0x42c] ss:$16 sps:$4 sm:$0xff]  }
 0x1c4   :  { %1382 = vmatpush1.bf16.msra.mxu0 %v4457_v51  ;;  %v4535_v45 = vld [vmem:[%s6566_s2 + $0x228] ss:$16 sps:$4 sm:$0xff]   ;;  %v4543_v48 = vld [vmem:[%s6566_s2 + $0x20c] ss:$16 sps:$4 sm:$0xff]  }
 0x1c5   :  { %1383 = vmatprep.subr.bf16.mxu0 %v4465_v56  ;;  %v4538_v49 = vld [vmem:[%s6566_s2 + $0x428] ss:$16 sps:$4 sm:$0xff]   ;;  %v4546_v50 = vld [vmem:[%s6566_s2 + $0x40c] ss:$16 sps:$4 sm:$0xff]   ;;  %v4549_v56 = vld [vmem:[%s6566_s2 + $0x5e4] ss:$16 sps:$4 sm:$0xff]  }
 0x1c6   :  { %1423 = vmatpush1.bf16.msra.mxu1 %v4460_v57  ;;  %v4541_v51 = vld [vmem:[%s6566_s2 + $0x208] ss:$16 sps:$4 sm:$0xff]  }
 0x1c7   :  { %1424 = vmatprep.subr.bf16.mxu1 %v4468_v58  ;;  %v4544_v57 = vld [vmem:[%s6566_s2 + $0x408] ss:$16 sps:$4 sm:$0xff]   ;;  %v4552_v58 = vld [vmem:[%s6566_s2 + $0x7e4] ss:$16 sps:$4 sm:$0xff]  }
 0x1c8   :  { %1384 = vmatpush1.bf16.msra.mxu0 %v4463_v59  ;;  %v4547_v59 = vld [vmem:[%s6566_s2 + $0x5e0] ss:$16 sps:$4 sm:$0xff]  }
 0x1c9   :  { %1385 = vmatprep.subr.bf16.mxu0 %v4471_v60  ;;  %v4555_v60 = vld [vmem:[%s6566_s2 + $0x5c4] ss:$16 sps:$4 sm:$0xff]  }
 0x1ca   :  { %1425 = vmatpush1.bf16.msra.mxu1 %v4466_v61  ;;  %v4550_v61 = vld [vmem:[%s6566_s2 + $0x7e0] ss:$16 sps:$4 sm:$0xff]  }
 0x1cb   :  { %1426 = vmatprep.subr.bf16.mxu1 %v4474_v62  ;;  %v4558_v62 = vld [vmem:[%s6566_s2 + $0x7c4] ss:$16 sps:$4 sm:$0xff]  }
 0x1cc   :  { %1386 = vmatpush1.bf16.msra.mxu0 %v4469_v63  ;;  %v4553_v63 = vld [vmem:[%s6566_s2 + $0x5c0] ss:$16 sps:$4 sm:$0xff]  }
 0x1cd   :  { %1387 = vmatprep.subr.bf16.mxu0 %v4477_v0  ;;  %v4561_v0 = vld [vmem:[%s6566_s2 + $0x5a4] ss:$16 sps:$4 sm:$0xff]  }
 0x1ce   :  { %1427 = vmatpush1.bf16.msra.mxu1 %v4472_v1  ;;  %v4556_v1 = vld [vmem:[%s6566_s2 + $0x7c0] ss:$16 sps:$4 sm:$0xff]  }
 0x1cf   :  { %1428 = vmatprep.subr.bf16.mxu1 %v4480_v2  ;;  %v4564_v2 = vld [vmem:[%s6566_s2 + $0x7a4] ss:$16 sps:$4 sm:$0xff]  }
 0x1d0   :  { %1388 = vmatpush1.bf16.msra.mxu0 %v4475_v4  ;;  %v4559_v4 = vld [vmem:[%s6566_s2 + $0x5a0] ss:$16 sps:$4 sm:$0xff]  }
 0x1d1   :  { %1389 = vmatprep.subr.bf16.mxu0 %v4483_v5  ;;  %v4567_v5 = vld [vmem:[%s6566_s2 + $0x584] ss:$16 sps:$4 sm:$0xff]  }
 0x1d2   :  { %1429 = vmatpush1.bf16.msra.mxu1 %v4478_v6  ;;  %v4562_v6 = vld [vmem:[%s6566_s2 + $0x7a0] ss:$16 sps:$4 sm:$0xff]  }
 0x1d3   :  { %1430 = vmatprep.subr.bf16.mxu1 %v4486_v7  ;;  %v4570_v7 = vld [vmem:[%s6566_s2 + $0x784] ss:$16 sps:$4 sm:$0xff]  }
 0x1d4   :  { %1390 = vmatpush1.bf16.msra.mxu0 %v4481_v8  ;;  %v4565_v8 = vld [vmem:[%s6566_s2 + $0x580] ss:$16 sps:$4 sm:$0xff]  }
 0x1d5   :  { %1391 = vmatprep.subr.bf16.mxu0 %v4489_v13  ;;  %v4573_v13 = vld [vmem:[%s6566_s2 + $0x564] ss:$16 sps:$4 sm:$0xff]  }
 0x1d6   :  { %1431 = vmatpush1.bf16.msra.mxu1 %v4484_v16  ;;  %v4568_v16 = vld [vmem:[%s6566_s2 + $0x780] ss:$16 sps:$4 sm:$0xff]  }
 0x1d7   :  { %1432 = vmatprep.subr.bf16.mxu1 %v4492_v18  ;;  %v4576_v18 = vld [vmem:[%s6566_s2 + $0x764] ss:$16 sps:$4 sm:$0xff]  }
 0x1d8   :  { %1392 = vmatpush1.bf16.msra.mxu0 %v4487_v19  ;;  %v4571_v19 = vld [vmem:[%s6566_s2 + $0x560] ss:$16 sps:$4 sm:$0xff]  }
 0x1d9   :  { %1393 = vmatprep.subr.bf16.mxu0 %v4495_v20  ;;  %v4579_v20 = vld [vmem:[%s6566_s2 + $0x544] ss:$16 sps:$4 sm:$0xff]  }
 0x1da   :  { %1433 = vmatpush1.bf16.msra.mxu1 %v4490_v21  ;;  %v4574_v21 = vld [vmem:[%s6566_s2 + $0x760] ss:$16 sps:$4 sm:$0xff]  }
 0x1db   :  { %1434 = vmatprep.subr.bf16.mxu1 %v4498_v22  ;;  %v4582_v22 = vld [vmem:[%s6566_s2 + $0x744] ss:$16 sps:$4 sm:$0xff]  }
 0x1dc   :  { %1394 = vmatpush1.bf16.msra.mxu0 %v4493_v3  ;;  %v4577_v3 = vld [vmem:[%s6566_s2 + $0x540] ss:$16 sps:$4 sm:$0xff]  }
 0x1dd   :  { %1395 = vmatprep.subr.bf16.mxu0 %v4501_v23  ;;  %v4585_v23 = vld [vmem:[%s6566_s2 + $0x524] ss:$16 sps:$4 sm:$0xff]  }
 0x1de   :  { %1435 = vmatpush1.bf16.msra.mxu1 %v4496_v10  ;;  %v4580_v10 = vld [vmem:[%s6566_s2 + $0x740] ss:$16 sps:$4 sm:$0xff]  }
 0x1df   :  { %1436 = vmatprep.subr.bf16.mxu1 %v4504_v24  ;;  %v4588_v24 = vld [vmem:[%s6566_s2 + $0x724] ss:$16 sps:$4 sm:$0xff]  }
 0x1e0   :  { %1396 = vmatpush2.bf16.msra.mxu0 %v4499_v9  ;;  %v4583_v9 = vld [vmem:[%s6566_s2 + $0x520] ss:$16 sps:$4 sm:$0xff]  }
 0x1e1   :  { %1397 = vmatprep.subr.bf16.mxu0 %v4507_v25  ;;  %v4591_v25 = vld [vmem:[%s6566_s2 + $0x504] ss:$16 sps:$4 sm:$0xff]  }
 0x1e2   :  { %1437 = vmatpush2.bf16.msra.mxu1 %v4502_v17  ;;  %v4586_v17 = vld [vmem:[%s6566_s2 + $0x720] ss:$16 sps:$4 sm:$0xff]  }
 0x1e3   :  { %1438 = vmatprep.subr.bf16.mxu1 %v4510_v26  ;;  %v4594_v26 = vld [vmem:[%s6566_s2 + $0x704] ss:$16 sps:$4 sm:$0xff]  }
 0x1e4   :  { %1398 = vmatpush2.bf16.msra.mxu0 %v4505_v52  ;;  %v4589_v52 = vld [vmem:[%s6566_s2 + $0x500] ss:$16 sps:$4 sm:$0xff]  }
 0x1e5   :  { %1399 = vmatprep.subr.bf16.mxu0 %v4513_v53  ;;  %v4597_v53 = vld [vmem:[%s6566_s2 + $0x6e4] ss:$16 sps:$4 sm:$0xff]  }
 0x1e6   :  { %1439 = vmatpush2.bf16.msra.mxu1 %v4508_v54  ;;  %v4592_v54 = vld [vmem:[%s6566_s2 + $0x700] ss:$16 sps:$4 sm:$0xff]  }
 0x1e7   :  { %1440 = vmatprep.subr.bf16.mxu1 %v4516_v55  ;;  %v4600_v55 = vld [vmem:[%s6566_s2 + $0x8e4] ss:$16 sps:$4 sm:$0xff]  }
 0x1e8   :  { %1400 = vmatpush2.bf16.msra.mxu0 %v4511_v27  ;;  %v4595_v27 = vld [vmem:[%s6566_s2 + $0x6e0] ss:$16 sps:$4 sm:$0xff]  }
 0x1e9   :  { %1401 = vmatprep.subr.bf16.mxu0 %v4519_v28  ;;  %v4603_v28 = vld [vmem:[%s6566_s2 + $0x6c4] ss:$16 sps:$4 sm:$0xff]  }
 0x1ea   :  { %1441 = vmatpush2.bf16.msra.mxu1 %v4514_v29  ;;  %v4598_v29 = vld [vmem:[%s6566_s2 + $0x8e0] ss:$16 sps:$4 sm:$0xff]  }
 0x1eb   :  { %1442 = vmatprep.subr.bf16.mxu1 %v4522_v30  ;;  %v4606_v30 = vld [vmem:[%s6566_s2 + $0x8c4] ss:$16 sps:$4 sm:$0xff]  }
 0x1ec   :  { %1402 = vmatpush2.bf16.msra.mxu0 %v4517_v31  ;;  %v4601_v31 = vld [vmem:[%s6566_s2 + $0x6c0] ss:$16 sps:$4 sm:$0xff]  }
 0x1ed   :  { %1403 = vmatprep.subr.bf16.mxu0 %v4525_v32  ;;  %v4609_v32 = vld [vmem:[%s6566_s2 + $0x6a4] ss:$16 sps:$4 sm:$0xff]  }
 0x1ee   :  { %1443 = vmatpush2.bf16.msra.mxu1 %v4520_v33  ;;  %v4604_v33 = vld [vmem:[%s6566_s2 + $0x8c0] ss:$16 sps:$4 sm:$0xff]  }
 0x1ef   :  { %1444 = vmatprep.subr.bf16.mxu1 %v4528_v34  ;;  %v4612_v34 = vld [vmem:[%s6566_s2 + $0x8a4] ss:$16 sps:$4 sm:$0xff]  }
 0x1f0   :  { %1404 = vmatpush2.bf16.msra.mxu0 %v4523_v35  ;;  %v4607_v35 = vld [vmem:[%s6566_s2 + $0x6a0] ss:$16 sps:$4 sm:$0xff]  }
 0x1f1   :  { %1405 = vmatprep.subr.bf16.mxu0 %v4531_v36  ;;  %v4615_v36 = vld [vmem:[%s6566_s2 + $0x684] ss:$16 sps:$4 sm:$0xff]  }
 0x1f2   :  { %1445 = vmatpush2.bf16.msra.mxu1 %v4526_v37  ;;  %v4610_v37 = vld [vmem:[%s6566_s2 + $0x8a0] ss:$16 sps:$4 sm:$0xff]  }
 0x1f3   :  { %1446 = vmatprep.subr.bf16.mxu1 %v4534_v38  ;;  %v4618_v38 = vld [vmem:[%s6566_s2 + $0x884] ss:$16 sps:$4 sm:$0xff]  }
 0x1f4   :  { %1406 = vmatpush2.bf16.msra.mxu0 %v4529_v40  ;;  %v4613_v40 = vld [vmem:[%s6566_s2 + $0x680] ss:$16 sps:$4 sm:$0xff]  }
 0x1f5   :  { %1407 = vmatprep.subr.bf16.mxu0 %v4537_v42  ;;  %v4621_v42 = vld [vmem:[%s6566_s2 + $0x664] ss:$16 sps:$4 sm:$0xff]  }
 0x1f6   :  { %1447 = vmatpush2.bf16.msra.mxu1 %v4532_v43  ;;  %v4616_v43 = vld [vmem:[%s6566_s2 + $0x880] ss:$16 sps:$4 sm:$0xff]  }
 0x1f7   :  { %1448 = vmatprep.subr.bf16.mxu1 %v4540_v44  ;;  %v4624_v44 = vld [vmem:[%s6566_s2 + $0x864] ss:$16 sps:$4 sm:$0xff]  }
 0x1f8   :  { %1408 = vmatpush2.bf16.msra.mxu0 %v4535_v45  ;;  %v4619_v45 = vld [vmem:[%s6566_s2 + $0x660] ss:$16 sps:$4 sm:$0xff]  }
 0x1f9   :  { %1409 = vmatprep.subr.bf16.mxu0 %v4543_v48  ;;  %v4627_v48 = vld [vmem:[%s6566_s2 + $0x644] ss:$16 sps:$4 sm:$0xff]  }
 0x1fa   :  { %1449 = vmatpush2.bf16.msra.mxu1 %v4538_v49  ;;  %v4622_v49 = vld [vmem:[%s6566_s2 + $0x860] ss:$16 sps:$4 sm:$0xff]  }
 0x1fb   :  { %1450 = vmatprep.subr.bf16.mxu1 %v4546_v50  ;;  %v4630_v50 = vld [vmem:[%s6566_s2 + $0x844] ss:$16 sps:$4 sm:$0xff]  }
 0x1fc   :  { %1410 = vmatpush2.bf16.msra.mxu0 %v4541_v51  ;;  %v4625_v51 = vld [vmem:[%s6566_s2 + $0x640] ss:$16 sps:$4 sm:$0xff]  }
 0x1fd   :  { %2229 = vmatprep.subr.bf16.mxu0 %v4549_v56  ;;  %v4633_v56 = vld [vmem:[%s6566_s2 + $0x624] ss:$16 sps:$4 sm:$0xff]  }
 0x1fe   :  { %1451 = vmatpush2.bf16.msra.mxu1 %v4544_v57  ;;  %v4628_v57 = vld [vmem:[%s6566_s2 + $0x840] ss:$16 sps:$4 sm:$0xff]  }
 0x1ff   :  { %1412 = vmatmul.mubr.bf16.vlgmr.msra.gmra.mxu0 %v5423_v39  ;;  %2270 = vmatprep.subr.bf16.mxu1 %v4552_v58  ;;  %v4636_v58 = vld [vmem:[%s6566_s2 + $0x824] ss:$16 sps:$4 sm:$0xff]  }
 0x200   :  { %2230 = vmatpush1.bf16.msra.mxu0 %v4547_v59  ;;  %2261 = vmatprep.mubr.bf16.mxu0 %v5425_v41  ;;  %v4631_v59 = vld [vmem:[%s6566_s2 + $0x620] ss:$16 sps:$4 sm:$0xff]  }
 0x201   :  { %1453 = vmatmul.mubr.bf16.vlgmr.msra.gmra.mxu1 %v5431_v46  ;;  %2231 = vmatprep.subr.bf16.mxu0 %v4555_v60  ;;  %v4639_v60 = vld [vmem:[%s6566_s2 + $0x604] ss:$16 sps:$4 sm:$0xff]  }
 0x202   :  { %2271 = vmatpush1.bf16.msra.mxu1 %v4550_v61  ;;  %2302 = vmatprep.mubr.bf16.mxu1 %v5434_v47  ;;  %v4634_v61 = vld [vmem:[%s6566_s2 + $0x820] ss:$16 sps:$4 sm:$0xff]  }
 0x203   :  { %2272 = vmatprep.subr.bf16.mxu1 %v4558_v62  ;;  %v4642_v62 = vld [vmem:[%s6566_s2 + $0x804] ss:$16 sps:$4 sm:$0xff]  }
 0x204   :  { %2232 = vmatpush1.bf16.msra.mxu0 %v4553_v63  ;;  %v4637_v63 = vld [vmem:[%s6566_s2 + $0x600] ss:$16 sps:$4 sm:$0xff]  }
 0x205   :  { %2233 = vmatprep.subr.bf16.mxu0 %v4561_v0  ;;  %v4645_v0 = vld [vmem:[%s6566_s2 + $0x5ec] ss:$16 sps:$4 sm:$0xff]  }
 0x206   :  { %2273 = vmatpush1.bf16.msra.mxu1 %v4556_v1  ;;  %v4640_v1 = vld [vmem:[%s6566_s2 + $0x800] ss:$16 sps:$4 sm:$0xff]  }
 0x207   :  { %2274 = vmatprep.subr.bf16.mxu1 %v4564_v2  ;;  %v4648_v2 = vld [vmem:[%s6566_s2 + $0x7ec] ss:$16 sps:$4 sm:$0xff]  }
 0x208   :  { %2234 = vmatpush1.bf16.msra.mxu0 %v4559_v4  ;;  %v4643_v4 = vld [vmem:[%s6566_s2 + $0x5e8] ss:$16 sps:$4 sm:$0xff]  }
 0x209   :  { %2235 = vmatprep.subr.bf16.mxu0 %v4567_v5  ;;  %v4651_v5 = vld [vmem:[%s6566_s2 + $0x5cc] ss:$16 sps:$4 sm:$0xff]  }
 0x20a   :  { %2275 = vmatpush1.bf16.msra.mxu1 %v4562_v6  ;;  %v4646_v6 = vld [vmem:[%s6566_s2 + $0x7e8] ss:$16 sps:$4 sm:$0xff]  }
 0x20b   :  { %2276 = vmatprep.subr.bf16.mxu1 %v4570_v7  ;;  %v4654_v7 = vld [vmem:[%s6566_s2 + $0x7cc] ss:$16 sps:$4 sm:$0xff]  }
 0x20c   :  { %2236 = vmatpush1.bf16.msra.mxu0 %v4565_v8  ;;  %v4649_v8 = vld [vmem:[%s6566_s2 + $0x5c8] ss:$16 sps:$4 sm:$0xff]  }
 0x20d   :  { %2237 = vmatprep.subr.bf16.mxu0 %v4573_v13  ;;  %v4657_v13 = vld [vmem:[%s6566_s2 + $0x5ac] ss:$16 sps:$4 sm:$0xff]  }
 0x20e   :  { %2277 = vmatpush1.bf16.msra.mxu1 %v4568_v16  ;;  %v4652_v16 = vld [vmem:[%s6566_s2 + $0x7c8] ss:$16 sps:$4 sm:$0xff]  }
 0x20f   :  { %2278 = vmatprep.subr.bf16.mxu1 %v4576_v18  ;;  %v4655_v18 = vld [vmem:[%s6566_s2 + $0x5a8] ss:$16 sps:$4 sm:$0xff]  }
 0x210   :  { %2238 = vmatpush1.bf16.msra.mxu0 %v4571_v19  ;;  %v4663_v19 = vld [vmem:[%s6566_s2 + $0x58c] ss:$16 sps:$4 sm:$0xff]  }
 0x211   :  { %2239 = vmatprep.subr.bf16.mxu0 %v4579_v20  ;;  %v4666_v20 = vld [vmem:[%s6566_s2 + $0x78c] ss:$16 sps:$4 sm:$0xff]  }
 0x212   :  { %2279 = vmatpush1.bf16.msra.mxu1 %v4574_v21  ;;  %v4661_v21 = vld [vmem:[%s6566_s2 + $0x588] ss:$16 sps:$4 sm:$0xff]  }
 0x213   :  { %2280 = vmatprep.subr.bf16.mxu1 %v4582_v22  ;;  %v4669_v22 = vld [vmem:[%s6566_s2 + $0x56c] ss:$16 sps:$4 sm:$0xff]  }
 0x214   :  { %2240 = vmatpush1.bf16.msra.mxu0 %v4577_v3  ;;  %v4664_v3 = vld [vmem:[%s6566_s2 + $0x788] ss:$16 sps:$4 sm:$0xff]  }
 0x215   :  { %2241 = vmatprep.subr.bf16.mxu0 %v4585_v23  ;;  %v4672_v23 = vld [vmem:[%s6566_s2 + $0x76c] ss:$16 sps:$4 sm:$0xff]  }
 0x216   :  { %2281 = vmatpush1.bf16.msra.mxu1 %v4580_v10  ;;  %v4667_v10 = vld [vmem:[%s6566_s2 + $0x568] ss:$16 sps:$4 sm:$0xff]  }
 0x217   :  { %2282 = vmatprep.subr.bf16.mxu1 %v4588_v24  ;;  %v4675_v24 = vld [vmem:[%s6566_s2 + $0x54c] ss:$16 sps:$4 sm:$0xff]  }
 0x218   :  { %2242 = vmatpush1.bf16.msra.mxu0 %v4583_v9  ;;  %v4670_v9 = vld [vmem:[%s6566_s2 + $0x768] ss:$16 sps:$4 sm:$0xff]  }
 0x219   :  { %2243 = vmatprep.subr.bf16.mxu0 %v4591_v25  ;;  %v4678_v25 = vld [vmem:[%s6566_s2 + $0x74c] ss:$16 sps:$4 sm:$0xff]  }
 0x21a   :  { %2283 = vmatpush1.bf16.msra.mxu1 %v4586_v17  ;;  %v4673_v17 = vld [vmem:[%s6566_s2 + $0x548] ss:$16 sps:$4 sm:$0xff]  }
 0x21b   :  { %2284 = vmatprep.subr.bf16.mxu1 %v4594_v26  ;;  %v4681_v26 = vld [vmem:[%s6566_s2 + $0x52c] ss:$16 sps:$4 sm:$0xff]  }
 0x21c   :  { %2244 = vmatpush1.bf16.msra.mxu0 %v4589_v52  ;;  %v4676_v52 = vld [vmem:[%s6566_s2 + $0x748] ss:$16 sps:$4 sm:$0xff]  }
 0x21d   :  { %2245 = vmatprep.subr.bf16.mxu0 %v4597_v53  ;;  %v4684_v53 = vld [vmem:[%s6566_s2 + $0x72c] ss:$16 sps:$4 sm:$0xff]  }
 0x21e   :  { %2285 = vmatpush1.bf16.msra.mxu1 %v4592_v54  ;;  %v4679_v54 = vld [vmem:[%s6566_s2 + $0x528] ss:$16 sps:$4 sm:$0xff]  }
 0x21f   :  { %2286 = vmatprep.subr.bf16.mxu1 %v4600_v55  ;;  %v4687_v55 = vld [vmem:[%s6566_s2 + $0x50c] ss:$16 sps:$4 sm:$0xff]  }
 0x220   :  { %2246 = vmatpush2.bf16.msra.mxu0 %v4595_v27  ;;  %v4682_v27 = vld [vmem:[%s6566_s2 + $0x728] ss:$16 sps:$4 sm:$0xff]  }
 0x221   :  { %2247 = vmatprep.subr.bf16.mxu0 %v4603_v28  ;;  %v4690_v28 = vld [vmem:[%s6566_s2 + $0x70c] ss:$16 sps:$4 sm:$0xff]  }
 0x222   :  { %2287 = vmatpush2.bf16.msra.mxu1 %v4598_v29  ;;  %v4685_v29 = vld [vmem:[%s6566_s2 + $0x508] ss:$16 sps:$4 sm:$0xff]  }
 0x223   :  { %2288 = vmatprep.subr.bf16.mxu1 %v4606_v30  ;;  %v4693_v30 = vld [vmem:[%s6566_s2 + $0x6ec] ss:$16 sps:$4 sm:$0xff]  }
 0x224   :  { %2248 = vmatpush2.bf16.msra.mxu0 %v4601_v31  ;;  %v4688_v31 = vld [vmem:[%s6566_s2 + $0x708] ss:$16 sps:$4 sm:$0xff]  }
 0x225   :  { %2249 = vmatprep.subr.bf16.mxu0 %v4609_v32  ;;  %v4696_v32 = vld [vmem:[%s6566_s2 + $0x8ec] ss:$16 sps:$4 sm:$0xff]  }
 0x226   :  { %2289 = vmatpush2.bf16.msra.mxu1 %v4604_v33  ;;  %v4691_v33 = vld [vmem:[%s6566_s2 + $0x6e8] ss:$16 sps:$4 sm:$0xff]  }
 0x227   :  { %2290 = vmatprep.subr.bf16.mxu1 %v4612_v34  ;;  %v4699_v34 = vld [vmem:[%s6566_s2 + $0x6cc] ss:$16 sps:$4 sm:$0xff]  }
 0x228   :  { %2250 = vmatpush2.bf16.msra.mxu0 %v4607_v35  ;;  %v4694_v35 = vld [vmem:[%s6566_s2 + $0x8e8] ss:$16 sps:$4 sm:$0xff]  }
 0x229   :  { %2251 = vmatprep.subr.bf16.mxu0 %v4615_v36  ;;  %v4702_v36 = vld [vmem:[%s6566_s2 + $0x8cc] ss:$16 sps:$4 sm:$0xff]  }
 0x22a   :  { %2291 = vmatpush2.bf16.msra.mxu1 %v4610_v37  ;;  %v4697_v37 = vld [vmem:[%s6566_s2 + $0x6c8] ss:$16 sps:$4 sm:$0xff]  }
 0x22b   :  { %2292 = vmatprep.subr.bf16.mxu1 %v4618_v38  ;;  %v4705_v38 = vld [vmem:[%s6566_s2 + $0x6ac] ss:$16 sps:$4 sm:$0xff]  }
 0x22c   :  { %2252 = vmatpush2.bf16.msra.mxu0 %v4613_v40  ;;  %v4700_v40 = vld [vmem:[%s6566_s2 + $0x8c8] ss:$16 sps:$4 sm:$0xff]  }
 0x22d   :  { %2253 = vmatprep.subr.bf16.mxu0 %v4621_v42  ;;  %v4708_v42 = vld [vmem:[%s6566_s2 + $0x8ac] ss:$16 sps:$4 sm:$0xff]  }
 0x22e   :  { %2293 = vmatpush2.bf16.msra.mxu1 %v4616_v43  ;;  %v4703_v43 = vld [vmem:[%s6566_s2 + $0x6a8] ss:$16 sps:$4 sm:$0xff]  }
 0x22f   :  { %2294 = vmatprep.subr.bf16.mxu1 %v4624_v44  ;;  %v4711_v44 = vld [vmem:[%s6566_s2 + $0x68c] ss:$16 sps:$4 sm:$0xff]  }
 0x230   :  { %2254 = vmatpush2.bf16.msra.mxu0 %v4619_v45  ;;  %v4706_v45 = vld [vmem:[%s6566_s2 + $0x8a8] ss:$16 sps:$4 sm:$0xff]  }
 0x231   :  { %2255 = vmatprep.subr.bf16.mxu0 %v4627_v48  ;;  %v4714_v48 = vld [vmem:[%s6566_s2 + $0x88c] ss:$16 sps:$4 sm:$0xff]  }
 0x232   :  { %2295 = vmatpush2.bf16.msra.mxu1 %v4622_v49  ;;  %v4709_v49 = vld [vmem:[%s6566_s2 + $0x688] ss:$16 sps:$4 sm:$0xff]  }
 0x233   :  { %2296 = vmatprep.subr.bf16.mxu1 %v4630_v50  ;;  %v4717_v50 = vld [vmem:[%s6566_s2 + $0x66c] ss:$16 sps:$4 sm:$0xff]  }
 0x234   :  { %2256 = vmatpush2.bf16.msra.mxu0 %v4625_v51  ;;  %v4712_v51 = vld [vmem:[%s6566_s2 + $0x888] ss:$16 sps:$4 sm:$0xff]  }
 0x235   :  { %2257 = vmatprep.subr.bf16.mxu0 %v4633_v56  ;;  %v4720_v56 = vld [vmem:[%s6566_s2 + $0x86c] ss:$16 sps:$4 sm:$0xff]  }
 0x236   :  { %2297 = vmatpush2.bf16.msra.mxu1 %v4628_v57  ;;  %v4715_v57 = vld [vmem:[%s6566_s2 + $0x668] ss:$16 sps:$4 sm:$0xff]  }
 0x237   :  { %2298 = vmatprep.subr.bf16.mxu1 %v4636_v58  ;;  %v4723_v58 = vld [vmem:[%s6566_s2 + $0x64c] ss:$16 sps:$4 sm:$0xff]  }
 0x238   :  { %2258 = vmatpush2.bf16.msra.mxu0 %v4631_v59  ;;  %v4718_v59 = vld [vmem:[%s6566_s2 + $0x868] ss:$16 sps:$4 sm:$0xff]  }
 0x239   :  { %2259 = vmatprep.subr.bf16.mxu0 %v4639_v60  ;;  %v4726_v60 = vld [vmem:[%s6566_s2 + $0x84c] ss:$16 sps:$4 sm:$0xff]  }
 0x23a   :  { %2299 = vmatpush2.bf16.msra.mxu1 %v4634_v61  ;;  %v4721_v61 = vld [vmem:[%s6566_s2 + $0x648] ss:$16 sps:$4 sm:$0xff]  }
 0x23b   :  { %2300 = vmatprep.subr.bf16.mxu1 %v4642_v62  ;;  %v4729_v62 = vld [vmem:[%s6566_s2 + $0x62c] ss:$16 sps:$4 sm:$0xff]  }
 0x23c   :  { %2260 = vmatpush2.bf16.msra.mxu0 %v4637_v63  ;;  %v4724_v63 = vld [vmem:[%s6566_s2 + $0x848] ss:$16 sps:$4 sm:$0xff]  }
 0x23d   :  { %2311 = vmatprep.subr.bf16.mxu0 %v4645_v0  ;;  %v4732_v0 = vld [vmem:[%s6566_s2 + $0x82c] ss:$16 sps:$4 sm:$0xff]  }
 0x23e   :  { %2301 = vmatpush2.bf16.msra.mxu1 %v4640_v1  ;;  %v4727_v1 = vld [vmem:[%s6566_s2 + $0x628] ss:$16 sps:$4 sm:$0xff]  }
 0x23f   :  { %2262 = vmatmul.mubr.bf16.vlgmr.msra.gmra.mxu0 %v5423_v39  ;;  %2352 = vmatprep.subr.bf16.mxu1 %v4648_v2  ;;  %v4735_v2 = vld [vmem:[%s6566_s2 + $0x60c] ss:$16 sps:$4 sm:$0xff]  }
 0x240   :  { %2312 = vmatpush1.bf16.msra.mxu0 %v4643_v4  ;;  %2343 = vmatprep.mubr.bf16.mxu0 %v5425_v41  ;;  %v4660_v41 = vld [vmem:[%s6566_s2 + $0x7ac] ss:$16 sps:$4 sm:$0xff]   ;;  %v4730_v4 = vld [vmem:[%s6566_s2 + $0x828] ss:$16 sps:$4 sm:$0xff]  }
 0x241   :  { %2303 = vmatmul.mubr.bf16.vlgmr.msra.gmra.mxu1 %v5431_v46  ;;  %2313 = vmatprep.subr.bf16.mxu0 %v4651_v5  ;;  %v4738_v5 = vld [vmem:[%s6566_s2 + $0x80c] ss:$16 sps:$4 sm:$0xff]  }
 0x242   :  { %2353 = vmatpush1.bf16.msra.mxu1 %v4646_v6  ;;  %2384 = vmatprep.mubr.bf16.mxu1 %v5434_v47  ;;  %v4658_v47 = vld [vmem:[%s6566_s2 + $0x7a8] ss:$16 sps:$4 sm:$0xff]  }
 0x243   :  { %2354 = vmatprep.subr.bf16.mxu1 %v4654_v7  ;;  %v4733_v6 = vld [vmem:[%s6566_s2 + $0x608] ss:$16 sps:$4 sm:$0xff]   ;;  %v4741_v7 = vld [vmem:[%s6566_s2 + $0x9e4] ss:$16 sps:$4 sm:$0xff]  }
 0x244   :  { %2314 = vmatpush1.bf16.msra.mxu0 %v4649_v8  ;;  %v4736_v8 = vld [vmem:[%s6566_s2 + $0x808] ss:$16 sps:$4 sm:$0xff]  }
 0x245   :  { %2315 = vmatprep.subr.bf16.mxu0 %v4657_v13  ;;  %v4739_v13 = vld [vmem:[%s6566_s2 + $0x9e0] ss:$16 sps:$4 sm:$0xff]  }
 0x246   :  { %2355 = vmatpush1.bf16.msra.mxu1 %v4652_v16  ;;  %v4744_v16 = vld [vmem:[%s6566_s2 + $0x9c4] ss:$16 sps:$4 sm:$0xff]  }
 0x247   :  { %2356 = vmatprep.subr.bf16.mxu1 %v4660_v41 }
 0x248   :  { %2316 = vmatpush1.bf16.msra.mxu0 %v4655_v18  ;;  %v4742_v18 = vld [vmem:[%s6566_s2 + $0x9c0] ss:$16 sps:$4 sm:$0xff]  }
 0x249   :  { %2317 = vmatprep.subr.bf16.mxu0 %v4663_v19 }
 0x24a   :  { %2357 = vmatpush1.bf16.msra.mxu1 %v4658_v47 }
 0x24b   :  { %2358 = vmatprep.subr.bf16.mxu1 %v4666_v20  ;;  %v4747_v20 = vld [vmem:[%s6566_s2 + $0x9a4] ss:$16 sps:$4 sm:$0xff]  }
 0x24c   :  { %2318 = vmatpush1.bf16.msra.mxu0 %v4661_v21 }
 0x24d   :  { %2319 = vmatprep.subr.bf16.mxu0 %v4669_v22 }
 0x24e   :  { %2359 = vmatpush1.bf16.msra.mxu1 %v4664_v3 }
 0x24f   :  { %2360 = vmatprep.subr.bf16.mxu1 %v4672_v23  ;;  %v4745_v23 = vld [vmem:[%s6566_s2 + $0x9a0] ss:$16 sps:$4 sm:$0xff]  }
 0x250   :  { %2320 = vmatpush1.bf16.msra.mxu0 %v4667_v10 }
 0x251   :  { %2321 = vmatprep.subr.bf16.mxu0 %v4675_v24  ;;  %v4750_v24 = vld [vmem:[%s6566_s2 + $0x984] ss:$16 sps:$4 sm:$0xff]  }
 0x252   :  { %2361 = vmatpush1.bf16.msra.mxu1 %v4670_v9 }
 0x253   :  { %2362 = vmatprep.subr.bf16.mxu1 %v4678_v25  ;;  %v4748_v25 = vld [vmem:[%s6566_s2 + $0x980] ss:$16 sps:$4 sm:$0xff]  }
 0x254   :  { %2322 = vmatpush1.bf16.msra.mxu0 %v4673_v17  ;;  %v4753_v17 = vld [vmem:[%s6566_s2 + $0x964] ss:$16 sps:$4 sm:$0xff]  }
 0x255   :  { %2323 = vmatprep.subr.bf16.mxu0 %v4681_v26  ;;  %v4751_v26 = vld [vmem:[%s6566_s2 + $0x960] ss:$16 sps:$4 sm:$0xff]  }
 0x256   :  { %2363 = vmatpush1.bf16.msra.mxu1 %v4676_v52  ;;  %v4789_v52 = vld [vmem:[%s6566_s2 + $0xbe4] ss:$16 sps:$4 sm:$0xff]  }
 0x257   :  { %2364 = vmatprep.subr.bf16.mxu1 %v4684_v53  ;;  %v4756_v53 = vld [vmem:[%s6566_s2 + $0x944] ss:$16 sps:$4 sm:$0xff]  }
 0x258   :  { %2324 = vmatpush1.bf16.msra.mxu0 %v4679_v54  ;;  %v4787_v54 = vld [vmem:[%s6566_s2 + $0xbe0] ss:$16 sps:$4 sm:$0xff]  }
 0x259   :  { %2325 = vmatprep.subr.bf16.mxu0 %v4687_v55  ;;  %v4754_v55 = vld [vmem:[%s6566_s2 + $0x940] ss:$16 sps:$4 sm:$0xff]  }
 0x25a   :  { %2365 = vmatpush1.bf16.msra.mxu1 %v4682_v27  ;;  %v4793_v27 = vld [vmem:[%s6566_s2 + $0xbc0] ss:$16 sps:$4 sm:$0xff]  }
 0x25b   :  { %2366 = vmatprep.subr.bf16.mxu1 %v4690_v28  ;;  %v4795_v28 = vld [vmem:[%s6566_s2 + $0xbc4] ss:$16 sps:$4 sm:$0xff]  }
 0x25c   :  { %2326 = vmatpush1.bf16.msra.mxu0 %v4685_v29  ;;  %v4759_v29 = vld [vmem:[%s6566_s2 + $0x924] ss:$16 sps:$4 sm:$0xff]  }
 0x25d   :  { %2327 = vmatprep.subr.bf16.mxu0 %v4693_v30  ;;  %v4757_v30 = vld [vmem:[%s6566_s2 + $0x920] ss:$16 sps:$4 sm:$0xff]  }
 0x25e   :  { %2367 = vmatpush1.bf16.msra.mxu1 %v4688_v31  ;;  %v4799_v31 = vld [vmem:[%s6566_s2 + $0xba0] ss:$16 sps:$4 sm:$0xff]  }
 0x25f   :  { %2368 = vmatprep.subr.bf16.mxu1 %v4696_v32  ;;  %v4801_v32 = vld [vmem:[%s6566_s2 + $0xba4] ss:$16 sps:$4 sm:$0xff]  }
 0x260   :  { %2328 = vmatpush2.bf16.msra.mxu0 %v4691_v33  ;;  %v4762_v33 = vld [vmem:[%s6566_s2 + $0x904] ss:$16 sps:$4 sm:$0xff]  }
 0x261   :  { %2329 = vmatprep.subr.bf16.mxu0 %v4699_v34  ;;  %v4760_v34 = vld [vmem:[%s6566_s2 + $0x900] ss:$16 sps:$4 sm:$0xff]  }
 0x262   :  { %2369 = vmatpush2.bf16.msra.mxu1 %v4694_v35  ;;  %v4805_v35 = vld [vmem:[%s6566_s2 + $0xb80] ss:$16 sps:$4 sm:$0xff]  }
 0x263   :  { %2370 = vmatprep.subr.bf16.mxu1 %v4702_v36  ;;  %v4807_v36 = vld [vmem:[%s6566_s2 + $0xb84] ss:$16 sps:$4 sm:$0xff]  }
 0x264   :  { %2330 = vmatpush2.bf16.msra.mxu0 %v4697_v37  ;;  %v4765_v37 = vld [vmem:[%s6566_s2 + $0xae4] ss:$16 sps:$4 sm:$0xff]  }
 0x265   :  { %2331 = vmatprep.subr.bf16.mxu0 %v4705_v38  ;;  %v4763_v38 = vld [vmem:[%s6566_s2 + $0xae0] ss:$16 sps:$4 sm:$0xff]  }
 0x266   :  { %2371 = vmatpush2.bf16.msra.mxu1 %v4700_v40  ;;  %v4811_v40 = vld [vmem:[%s6566_s2 + $0xb60] ss:$16 sps:$4 sm:$0xff]  }
 0x267   :  { %2372 = vmatprep.subr.bf16.mxu1 %v4708_v42  ;;  %v4813_v42 = vld [vmem:[%s6566_s2 + $0xb64] ss:$16 sps:$4 sm:$0xff]  }
 0x268   :  { %2332 = vmatpush2.bf16.msra.mxu0 %v4703_v43  ;;  %v4768_v43 = vld [vmem:[%s6566_s2 + $0xac4] ss:$16 sps:$4 sm:$0xff]  }
 0x269   :  { %2333 = vmatprep.subr.bf16.mxu0 %v4711_v44  ;;  %v4766_v44 = vld [vmem:[%s6566_s2 + $0xac0] ss:$16 sps:$4 sm:$0xff]  }
 0x26a   :  { %2373 = vmatpush2.bf16.msra.mxu1 %v4706_v45  ;;  %v4817_v45 = vld [vmem:[%s6566_s2 + $0xb40] ss:$16 sps:$4 sm:$0xff]  }
 0x26b   :  { %2374 = vmatprep.subr.bf16.mxu1 %v4714_v48  ;;  %v4819_v48 = vld [vmem:[%s6566_s2 + $0xb44] ss:$16 sps:$4 sm:$0xff]  }
 0x26c   :  { %2334 = vmatpush2.bf16.msra.mxu0 %v4709_v49  ;;  %v4771_v49 = vld [vmem:[%s6566_s2 + $0xaa4] ss:$16 sps:$4 sm:$0xff]  }
 0x26d   :  { %2335 = vmatprep.subr.bf16.mxu0 %v4717_v50  ;;  %v4769_v50 = vld [vmem:[%s6566_s2 + $0xaa0] ss:$16 sps:$4 sm:$0xff]  }
 0x26e   :  { %2375 = vmatpush2.bf16.msra.mxu1 %v4712_v51  ;;  %v4823_v51 = vld [vmem:[%s6566_s2 + $0xb20] ss:$16 sps:$4 sm:$0xff]  }
 0x26f   :  { %2376 = vmatprep.subr.bf16.mxu1 %v4720_v56  ;;  %v4825_v56 = vld [vmem:[%s6566_s2 + $0xb24] ss:$16 sps:$4 sm:$0xff]  }
 0x270   :  { %2336 = vmatpush2.bf16.msra.mxu0 %v4715_v57  ;;  %v4774_v57 = vld [vmem:[%s6566_s2 + $0xa84] ss:$16 sps:$4 sm:$0xff]  }
 0x271   :  { %2337 = vmatprep.subr.bf16.mxu0 %v4723_v58  ;;  %v4772_v58 = vld [vmem:[%s6566_s2 + $0xa80] ss:$16 sps:$4 sm:$0xff]  }
 0x272   :  { %2377 = vmatpush2.bf16.msra.mxu1 %v4718_v59  ;;  %v4829_v59 = vld [vmem:[%s6566_s2 + $0xb00] ss:$16 sps:$4 sm:$0xff]  }
 0x273   :  { %2378 = vmatprep.subr.bf16.mxu1 %v4726_v60  ;;  %v4831_v60 = vld [vmem:[%s6566_s2 + $0xb04] ss:$16 sps:$4 sm:$0xff]  }
 0x274   :  { %2338 = vmatpush2.bf16.msra.mxu0 %v4721_v61  ;;  %v4777_v61 = vld [vmem:[%s6566_s2 + $0xa64] ss:$16 sps:$4 sm:$0xff]  }
 0x275   :  { %2339 = vmatprep.subr.bf16.mxu0 %v4729_v62  ;;  %v4775_v62 = vld [vmem:[%s6566_s2 + $0xa60] ss:$16 sps:$4 sm:$0xff]  }
 0x276   :  { %2379 = vmatpush2.bf16.msra.mxu1 %v4724_v63  ;;  %v4835_v63 = vld [vmem:[%s6566_s2 + $0xce0] ss:$16 sps:$4 sm:$0xff]  }
 0x277   :  { %2380 = vmatprep.subr.bf16.mxu1 %v4732_v0  ;;  %v4837_v0 = vld [vmem:[%s6566_s2 + $0xce4] ss:$16 sps:$4 sm:$0xff]  }
 0x278   :  { %2340 = vmatpush2.bf16.msra.mxu0 %v4727_v1  ;;  %v4780_v1 = vld [vmem:[%s6566_s2 + $0xa44] ss:$16 sps:$4 sm:$0xff]  }
 0x279   :  { %2341 = vmatprep.subr.bf16.mxu0 %v4735_v2  ;;  %v4778_v2 = vld [vmem:[%s6566_s2 + $0xa40] ss:$16 sps:$4 sm:$0xff]  }
 0x27a   :  { %2381 = vmatpush2.bf16.msra.mxu1 %v4730_v4  ;;  %v4841_v4 = vld [vmem:[%s6566_s2 + $0xcc0] ss:$16 sps:$4 sm:$0xff]  }
 0x27b   :  { %2382 = vmatprep.subr.bf16.mxu1 %v4738_v5  ;;  %v4843_v5 = vld [vmem:[%s6566_s2 + $0xcc4] ss:$16 sps:$4 sm:$0xff]  }
 0x27c   :  { %2342 = vmatpush2.bf16.msra.mxu0 %v4733_v6  ;;  %v4783_v6 = vld [vmem:[%s6566_s2 + $0xa24] ss:$16 sps:$4 sm:$0xff]  }
 0x27d   :  { %2816 = vmatprep.subr.bf16.mxu0 %v4741_v7  ;;  %v4781_v7 = vld [vmem:[%s6566_s2 + $0xa20] ss:$16 sps:$4 sm:$0xff]  }
 0x27e   :  { %2383 = vmatpush2.bf16.msra.mxu1 %v4736_v8  ;;  %v4847_v8 = vld [vmem:[%s6566_s2 + $0xca0] ss:$16 sps:$4 sm:$0xff]  }
 0x27f   :  { %2344 = vmatmul.mubr.bf16.vlgmr.msra.gmra.mxu0 %v5423_v39  ;;  %v1331_v41 = vpop.f32.mrf.mxu0  ;;  %2857 = vmatprep.subr.bf16.mxu1 %v4789_v52 }
 0x280   :  { %2817 = vmatpush1.bf16.msra.mxu0 %v4739_v13  ;;  %v4849_v13 = vld [vmem:[%s6566_s2 + $0xca4] ss:$16 sps:$4 sm:$0xff]  }
 0x281   :  { %2385 = vmatmul.mubr.bf16.vlgmr.msra.gmra.mxu1 %v5431_v46  ;;  %v1372_v19 = vpop.f32.mrf.mxu1  ;;  %v1333_v47 = vpop.f32.mrf.mxu0  ;;  %2818 = vmatprep.subr.bf16.mxu0 %v4744_v16  ;;  %v4786_v16 = vld [vmem:[%s6566_s2 + $0xa04] ss:$16 sps:$4 sm:$0xff]  }
 0x282   :  { %v6033_v21 = vadd.f32 %v1372_v19, %v1331_v41  ;;  %2858 = vmatpush1.bf16.msra.mxu1 %v4787_v54  ;;  %v4784_v41 = vld [vmem:[%s6566_s2 + $0xa00] ss:$16 sps:$4 sm:$0xff]   ;;  %v4855_v19 = vld [vmem:[%s6566_s2 + $0xc84] ss:$16 sps:$4 sm:$0xff]  }
 0x283   :  { %v1374_v22 = vpop.f32.mrf.mxu1  ;;  %v1335_v3 = vpop.f32.mrf.mxu0  ;;  %2859 = vmatprep.subr.bf16.mxu1 %v4795_v28  ;;  %v4873_v54 = vld [vmem:[%s6566_s2 + $0xc24] ss:$16 sps:$4 sm:$0xff]  }
 0x284   :  { %v6035_v39 = vadd.f32 %v1374_v22, %v1333_v47  ;;  %2819 = vmatpush1.bf16.msra.mxu0 %v4742_v18  ;;  %v4853_v18 = vld [vmem:[%s6566_s2 + $0xc80] ss:$16 sps:$4 sm:$0xff]   ;;  %v4792_v47 = vld [vmem:[%s6566_s2 + $0xde4] ss:$16 sps:$4 sm:$0xff]  }
 0x285   :  { %v1376_v10 = vpop.f32.mrf.mxu1  ;;  %v1336_v46 = vpop.f32.mrf.mxu0  ;;  %2820 = vmatprep.subr.bf16.mxu0 %v4747_v20  ;;  %v4859_v20 = vld [vmem:[%s6566_s2 + $0xc60] ss:$16 sps:$4 sm:$0xff]   ;;  %v4861_v22 = vld [vmem:[%s6566_s2 + $0xc64] ss:$16 sps:$4 sm:$0xff]  }
 0x286   :  { %2860 = vmatpush1.bf16.msra.mxu1 %v4793_v27  ;;  %v4867_v46 = vld [vmem:[%s6566_s2 + $0xc44] ss:$16 sps:$4 sm:$0xff]  }
 0x287   :  { %v1377_v9 = vpop.f32.mrf.mxu1  ;;  %2861 = vmatprep.subr.bf16.mxu1 %v4801_v32  ;;  %v4879_v28 = vld [vmem:[%s6566_s2 + $0xc04] ss:$16 sps:$4 sm:$0xff]   ;;  %v6227_v32 = vld [vmem:[%s6569_s3 + $0x2] ss:$8 sm:$0xf] }
 0x288   :  { %2821 = vmatpush1.bf16.msra.mxu0 %v4745_v23  ;;  %v4865_v9 = vld [vmem:[%s6566_s2 + $0xc40] ss:$16 sps:$4 sm:$0xff]  }
 0x289   :  { %2822 = vmatprep.subr.bf16.mxu0 %v4750_v24 }
 0x28a   :  { %2862 = vmatpush1.bf16.msra.mxu1 %v4799_v31 }
 0x28b   :  { %2863 = vmatprep.subr.bf16.mxu1 %v4807_v36  ;;  %v2403_v36 = vrot.slane %v6227_v32, %v5277_v11 }
 0x28c   :  { %2823 = vmatpush1.bf16.msra.mxu0 %v4748_v25 }
 0x28d   :  { %2824 = vmatprep.subr.bf16.mxu0 %v4753_v17 }
 0x28e   :  { %2864 = vmatpush1.bf16.msra.mxu1 %v4805_v35 }
 0x28f   :  { %2865 = vmatprep.subr.bf16.mxu1 %v4813_v42 }
 0x290   :  { %2825 = vmatpush1.bf16.msra.mxu0 %v4751_v26 }
 0x291   :  { %2826 = vmatprep.subr.bf16.mxu0 %v4756_v53 }
 0x292   :  { %2866 = vmatpush1.bf16.msra.mxu1 %v4811_v40 }
 0x293   :  { %2867 = vmatprep.subr.bf16.mxu1 %v4819_v48 }
 0x294   :  { %2827 = vmatpush1.bf16.msra.mxu0 %v4754_v55  ;;  %v4871_v55 = vld [vmem:[%s6566_s2 + $0xc20] ss:$16 sps:$4 sm:$0xff]  }
 0x295   :  { %2828 = vmatprep.subr.bf16.mxu0 %v4759_v29  ;;  %v4877_v29 = vld [vmem:[%s6566_s2 + $0xc00] ss:$16 sps:$4 sm:$0xff]  }
 0x296   :  { %2868 = vmatpush1.bf16.msra.mxu1 %v4817_v45 }
 0x297   :  { %2869 = vmatprep.subr.bf16.mxu1 %v4825_v56 }
 0x298   :  { %2829 = vmatpush1.bf16.msra.mxu0 %v4757_v30  ;;  %v4885_v30 = vld [vmem:[%s6566_s2 + $0xfe4] ss:$16 sps:$4 sm:$0xff]  }
 0x299   :  { %2830 = vmatprep.subr.bf16.mxu0 %v4762_v33 }
 0x29a   :  { %2870 = vmatpush1.bf16.msra.mxu1 %v4823_v51 }
 0x29b   :  { %2871 = vmatprep.subr.bf16.mxu1 %v4831_v60 }
 0x29c   :  { %2831 = vmatpush1.bf16.msra.mxu0 %v4760_v34 }
 0x29d   :  { %2832 = vmatprep.subr.bf16.mxu0 %v4765_v37 }
 0x29e   :  { %2872 = vmatpush1.bf16.msra.mxu1 %v4829_v59  ;;  %v4790_v59 = vld [vmem:[%s6566_s2 + $0xde0] ss:$16 sps:$4 sm:$0xff]  }
 0x29f   :  { %2873 = vmatprep.subr.bf16.mxu1 %v4837_v0  ;;  %v4808_v0 = vld [vmem:[%s6566_s2 + $0xd80] ss:$16 sps:$4 sm:$0xff]  }
 0x2a0   :  { %2833 = vmatpush2.bf16.msra.mxu0 %v4763_v38 }
 0x2a1   :  { %2834 = vmatprep.subr.bf16.mxu0 %v4768_v43  ;;  %v2407_v43 = vrot.slane %v6227_v32, %v5284_v14 }
 0x2a2   :  { %2874 = vmatpush2.bf16.msra.mxu1 %v4835_v63  ;;  %v4810_v63 = vld [vmem:[%s6566_s2 + $0xd84] ss:$16 sps:$4 sm:$0xff]  }
 0x2a3   :  { %2875 = vmatprep.subr.bf16.mxu1 %v4843_v5  ;;  %v4820_v5 = vld [vmem:[%s6566_s2 + $0xd40] ss:$16 sps:$4 sm:$0xff]  }
 0x2a4   :  { %2835 = vmatpush2.bf16.msra.mxu0 %v4766_v44 }
 0x2a5   :  { %2836 = vmatprep.subr.bf16.mxu0 %v4771_v49 }
 0x2a6   :  { %2876 = vmatpush2.bf16.msra.mxu1 %v4841_v4  ;;  %v4822_v4 = vld [vmem:[%s6566_s2 + $0xd44] ss:$16 sps:$4 sm:$0xff]  }
 0x2a7   :  { %2877 = vmatprep.subr.bf16.mxu1 %v4849_v13  ;;  %v4832_v13 = vld [vmem:[%s6566_s2 + $0xd00] ss:$16 sps:$4 sm:$0xff]  }
 0x2a8   :  { %2837 = vmatpush2.bf16.msra.mxu0 %v4769_v50 }
 0x2a9   :  { %2838 = vmatprep.subr.bf16.mxu0 %v4774_v57 }
 0x2aa   :  { %2878 = vmatpush2.bf16.msra.mxu1 %v4847_v8  ;;  %v4834_v8 = vld [vmem:[%s6566_s2 + $0xd04] ss:$16 sps:$4 sm:$0xff]  }
 0x2ab   :  { %2879 = vmatprep.subr.bf16.mxu1 %v4855_v19  ;;  %v4844_v19 = vld [vmem:[%s6566_s2 + $0xec0] ss:$16 sps:$4 sm:$0xff]  }
 0x2ac   :  { %2839 = vmatpush2.bf16.msra.mxu0 %v4772_v58 }
 0x2ad   :  { %2840 = vmatprep.subr.bf16.mxu0 %v4777_v61  ;;  %v4804_v61 = vld [vmem:[%s6566_s2 + $0xda4] ss:$16 sps:$4 sm:$0xff]  }
 0x2ae   :  { %2880 = vmatpush2.bf16.msra.mxu1 %v4853_v18  ;;  %v4846_v18 = vld [vmem:[%s6566_s2 + $0xec4] ss:$16 sps:$4 sm:$0xff]  }
 0x2af   :  { %2881 = vmatprep.subr.bf16.mxu1 %v4861_v22  ;;  %v4858_v22 = vld [vmem:[%s6566_s2 + $0xe84] ss:$16 sps:$4 sm:$0xff]  }
 0x2b0   :  { %2841 = vmatpush2.bf16.msra.mxu0 %v4775_v62  ;;  %v4802_v62 = vld [vmem:[%s6566_s2 + $0xda0] ss:$16 sps:$4 sm:$0xff]  }
 0x2b1   :  { %2842 = vmatprep.subr.bf16.mxu0 %v4780_v1  ;;  %v4816_v1 = vld [vmem:[%s6566_s2 + $0xd64] ss:$16 sps:$4 sm:$0xff]  }
 0x2b2   :  { %2882 = vmatpush2.bf16.msra.mxu1 %v4859_v20  ;;  %v4850_v20 = vld [vmem:[%s6566_s2 + $0xea0] ss:$16 sps:$4 sm:$0xff]  }
 0x2b3   :  { %2883 = vmatprep.subr.bf16.mxu1 %v4867_v46  ;;  %v4870_v46 = vld [vmem:[%s6566_s2 + $0xe44] ss:$16 sps:$4 sm:$0xff]  }
 0x2b4   :  { %2843 = vmatpush2.bf16.msra.mxu0 %v4778_v2  ;;  %v4814_v2 = vld [vmem:[%s6566_s2 + $0xd60] ss:$16 sps:$4 sm:$0xff]  }
 0x2b5   :  { %2844 = vmatprep.subr.bf16.mxu0 %v4783_v6  ;;  %v4828_v6 = vld [vmem:[%s6566_s2 + $0xd24] ss:$16 sps:$4 sm:$0xff]  }
 0x2b6   :  { %2884 = vmatpush2.bf16.msra.mxu1 %v4865_v9 }
 0x2b7   :  { %2885 = vmatprep.subr.bf16.mxu1 %v4873_v54 }
 0x2b8   :  { %2845 = vmatpush2.bf16.msra.mxu0 %v4781_v7  ;;  %v4826_v7 = vld [vmem:[%s6566_s2 + $0xd20] ss:$16 sps:$4 sm:$0xff]  }
 0x2b9   :  { %2846 = vmatprep.subr.bf16.mxu0 %v4786_v16  ;;  %v4840_v16 = vld [vmem:[%s6566_s2 + $0xee4] ss:$16 sps:$4 sm:$0xff]  }
 0x2ba   :  { %2886 = vmatpush2.bf16.msra.mxu1 %v4871_v55  ;;  %v2411_v55 = vrot.slane %v6227_v32, %v5279_v12  ;;  %v4882_v12 = vld [vmem:[%s6566_s2 + $0xe04] ss:$16 sps:$4 sm:$0xff]  }
 0x2bb   :  { %2887 = vmatprep.subr.bf16.mxu1 %v4879_v28 }
 0x2bc   :  { %2847 = vmatpush2.bf16.msra.mxu0 %v4784_v41  ;;  %v4838_v41 = vld [vmem:[%s6566_s2 + $0xee0] ss:$16 sps:$4 sm:$0xff]  }
 0x2bd   :  { %3282 = vmatprep.subr.bf16.mxu0 %v4792_v47  ;;  %v4852_v47 = vld [vmem:[%s6566_s2 + $0xea4] ss:$16 sps:$4 sm:$0xff]  }
 0x2be   :  { %2888 = vmatpush2.bf16.msra.mxu1 %v4877_v29 }
 0x2bf   :  { %v1413_v3 = vpop.f32.mrf.mxu0  ;;  %3323 = vmatprep.subr.bf16.mxu1 %v4885_v30 }
 0x2c1   :  { %v1454_v23 = vpop.f32.mrf.mxu1  ;;  %v1415_v10 = vpop.f32.mrf.mxu0 }
 0x2c2   :  { %v6202_v24 = vadd.f32 %v1454_v23, %v1413_v3  ;;  %v4856_v3 = vld [vmem:[%s6566_s2 + $0xe80] ss:$16 sps:$4 sm:$0xff]   ;;  %v4864_v23 = vld [vmem:[%s6566_s2 + $0xe64] ss:$16 sps:$4 sm:$0xff]  }
 0x2c3   :  { %v1456_v25 = vpop.f32.mrf.mxu1  ;;  %v1417_v17 = vpop.f32.mrf.mxu0 }
 0x2c4   :  { %v6207_v26 = vadd.f32 %v1456_v25, %v1415_v10  ;;  %v4862_v10 = vld [vmem:[%s6566_s2 + $0xe60] ss:$16 sps:$4 sm:$0xff]  }
 0x2c5   :  { %v1458_v52 = vpop.f32.mrf.mxu1  ;;  %v1418_v53 = vpop.f32.mrf.mxu0  ;;  %v4868_v25 = vld [vmem:[%s6566_s2 + $0xe40] ss:$16 sps:$4 sm:$0xff]  }
 0x2c6   :  { %v4876_v53 = vld [vmem:[%s6566_s2 + $0xe24] ss:$16 sps:$4 sm:$0xff]  }
 0x2c7   :  { %v1459_v27 = vpop.f32.mrf.mxu1 }
 0x2ff   :  { %v2263_v31 = vpop.f32.mrf.mxu0 }
 0x301   :  { %v2304_v33 = vpop.f32.mrf.mxu1  ;;  %v2265_v34 = vpop.f32.mrf.mxu0 }
 0x302   :  { %v2305_v35 = vadd.f32 %v2304_v33, %v2263_v31  ;;  %v2415_v31 = vrot.slane %v6227_v32, %v5286_v15  ;;  %v4874_v33 = vld [vmem:[%s6566_s2 + $0xe20] ss:$16 sps:$4 sm:$0xff]  }
 0x303   :  { %v2306_v37 = vpop.f32.mrf.mxu1  ;;  %v2267_v38 = vpop.f32.mrf.mxu0  ;;  %v4880_v15 = vld [vmem:[%s6566_s2 + $0xe00] ss:$16 sps:$4 sm:$0xff]  }
 0x304   :  { %v2393_v40 = vmax.f32 %v6033_v21, %v2305_v35  ;;  %v2307_v42 = vadd.f32 %v2306_v37, %v2265_v34  ;;  %v4798_v21 = vld [vmem:[%s6566_s2 + $0xdc4] ss:$16 sps:$4 sm:$0xff]  }
 0x305   :  { %v2308_v44 = vpop.f32.mrf.mxu1  ;;  %v2268_v45 = vpop.f32.mrf.mxu0 }
 0x306   :  { %v2420_v48 = vadd.f32 %v2403_v36, %v2393_v40  ;;  %v2394_v49 = vmax.f32 %v6035_v39, %v2307_v42  ;;  %v4796_v39 = vld [vmem:[%s6566_s2 + $0xdc0] ss:$16 sps:$4 sm:$0xff]  }
 0x307   :  { %v2309_v50 = vpop.f32.mrf.mxu1  ;;  %v4886_v45 = vld [vmem:[%s6566_s2 + $0xfc0] ss:$16 sps:$4 sm:$0xff]  }
 0x308   :  { %v2421_v51 = vadd.f32 %v2407_v43, %v2394_v49  ;;  %v2424_v56 = vmax.f32 %v2420_v48, 0.0  ;;  %v4883_v43 = vld [vmem:[%s6566_s2 + $0xfe0] ss:$16 sps:$4 sm:$0xff]   ;;  %v4891_v48 = vld [vmem:[%s6566_s2 + $0xfa4] ss:$16 sps:$4 sm:$0xff]  }
 0x309   :  { %v4889_v49 = vld [vmem:[%s6566_s2 + $0xfa0] ss:$16 sps:$4 sm:$0xff]   ;;  %v4894_v50 = vld [vmem:[%s6566_s2 + $0xf84] ss:$16 sps:$4 sm:$0xff]  }
 0x30a   :  { %v2425_v57 = vmax.f32 %v2421_v51, 0.0  ;;  %v6238_v60 = vpack.c.bf16 %v2424_v56, %v2424_v56  ;;  %v4892_v51 = vld [vmem:[%s6566_s2 + $0xf80] ss:$16 sps:$4 sm:$0xff]   ;;  %v4897_v56 = vld [vmem:[%s6566_s2 + $0xf64] ss:$16 sps:$4 sm:$0xff]  }
 0x30c   :  { %v2429_v58 = vpack.c.bf16 %v2425_v57, %v2425_v57  ;;  %v4895_v57 = vld [vmem:[%s6566_s2 + $0xf60] ss:$16 sps:$4 sm:$0xff]  }
 0x30e   :  { %2848 = vmatprep.mubr.bf16.mxu0 %v2429_v58 }
 0x30f   :  { %2849 = vmatmul.mubr.bf16.vlgmr.msra.gmra.mxu0 %v6238_v60 }
 0x310   :  { %3283 = vmatpush1.bf16.msra.mxu0 %v4790_v59  ;;  %3314 = vmatprep.mubr.bf16.mxu0 %v2429_v58  ;;  %v4900_v58 = vld [vmem:[%s6566_s2 + $0xf44] ss:$16 sps:$4 sm:$0xff]   ;;  %v4898_v59 = vld [vmem:[%s6566_s2 + $0xf40] ss:$16 sps:$4 sm:$0xff]  }
 0x311   :  { %3284 = vmatprep.subr.bf16.mxu0 %v4798_v21  ;;  %v4901_v21 = vld [vmem:[%s6566_s2 + $0xf20] ss:$16 sps:$4 sm:$0xff]  }
 0x314   :  { %3285 = vmatpush1.bf16.msra.mxu0 %v4796_v39  ;;  %v4906_v39 = vld [vmem:[%s6566_s2 + $0xf04] ss:$16 sps:$4 sm:$0xff]  }
 0x315   :  { %3286 = vmatprep.subr.bf16.mxu0 %v4804_v61  ;;  %v4904_v61 = vld [vmem:[%s6566_s2 + $0xf00] ss:$16 sps:$4 sm:$0xff]  }
 0x318   :  { %3287 = vmatpush1.bf16.msra.mxu0 %v4802_v62  ;;  %v4909_v62 = vld [vmem:[%s6566_s2 + $0x10e4] ss:$16 sps:$4 sm:$0xff]  }
 0x319   :  { %3288 = vmatprep.subr.bf16.mxu0 %v4810_v63  ;;  %v4907_v63 = vld [vmem:[%s6566_s2 + $0x10e0] ss:$16 sps:$4 sm:$0xff]  }
 0x31c   :  { %3289 = vmatpush1.bf16.msra.mxu0 %v4808_v0  ;;  %v4912_v0 = vld [vmem:[%s6566_s2 + $0x10c4] ss:$16 sps:$4 sm:$0xff]  }
 0x31d   :  { %3290 = vmatprep.subr.bf16.mxu0 %v4816_v1  ;;  %v4910_v1 = vld [vmem:[%s6566_s2 + $0x10c0] ss:$16 sps:$4 sm:$0xff]  }
 0x320   :  { %3291 = vmatpush1.bf16.msra.mxu0 %v4814_v2  ;;  %v4915_v2 = vld [vmem:[%s6566_s2 + $0x10a4] ss:$16 sps:$4 sm:$0xff]  }
 0x321   :  { %3292 = vmatprep.subr.bf16.mxu0 %v4822_v4  ;;  %v4913_v4 = vld [vmem:[%s6566_s2 + $0x10a0] ss:$16 sps:$4 sm:$0xff]  }
 0x324   :  { %3293 = vmatpush1.bf16.msra.mxu0 %v4820_v5  ;;  %v4918_v5 = vld [vmem:[%s6566_s2 + $0x1084] ss:$16 sps:$4 sm:$0xff]  }
 0x325   :  { %3294 = vmatprep.subr.bf16.mxu0 %v4828_v6  ;;  %v4916_v6 = vld [vmem:[%s6566_s2 + $0x1080] ss:$16 sps:$4 sm:$0xff]  }
 0x328   :  { %3295 = vmatpush1.bf16.msra.mxu0 %v4826_v7  ;;  %v4921_v7 = vld [vmem:[%s6566_s2 + $0x1064] ss:$16 sps:$4 sm:$0xff]  }
 0x329   :  { %3296 = vmatprep.subr.bf16.mxu0 %v4834_v8  ;;  %v4919_v8 = vld [vmem:[%s6566_s2 + $0x1060] ss:$16 sps:$4 sm:$0xff]  }
 0x32c   :  { %3297 = vmatpush1.bf16.msra.mxu0 %v4832_v13  ;;  %v4924_v13 = vld [vmem:[%s6566_s2 + $0x1044] ss:$16 sps:$4 sm:$0xff]  }
 0x32d   :  { %3298 = vmatprep.subr.bf16.mxu0 %v4840_v16  ;;  %v4922_v16 = vld [vmem:[%s6566_s2 + $0x1040] ss:$16 sps:$4 sm:$0xff]  }
 0x330   :  { %3299 = vmatpush2.bf16.msra.mxu0 %v4838_v41  ;;  %v4927_v41 = vld [vmem:[%s6566_s2 + $0x1024] ss:$16 sps:$4 sm:$0xff]  }
 0x331   :  { %3300 = vmatprep.subr.bf16.mxu0 %v4846_v18  ;;  %v4925_v18 = vld [vmem:[%s6566_s2 + $0x1020] ss:$16 sps:$4 sm:$0xff]  }
 0x334   :  { %3301 = vmatpush2.bf16.msra.mxu0 %v4844_v19  ;;  %v4930_v19 = vld [vmem:[%s6566_s2 + $0x1004] ss:$16 sps:$4 sm:$0xff]  }
 0x335   :  { %3302 = vmatprep.subr.bf16.mxu0 %v4852_v47  ;;  %v4928_v47 = vld [vmem:[%s6566_s2 + $0x1000] ss:$16 sps:$4 sm:$0xff]  }
 0x338   :  { %3303 = vmatpush2.bf16.msra.mxu0 %v4850_v20  ;;  %v4931_v20 = vld [vmem:[%s6566_s2 + $0x12e0] ss:$16 sps:$4 sm:$0xff]  }
 0x339   :  { %3304 = vmatprep.subr.bf16.mxu0 %v4858_v22  ;;  %v4932_v22 = vld [vmem:[%s6566_s2 + $0x11e0] ss:$16 sps:$4 sm:$0xff]  }
 0x33c   :  { %3305 = vmatpush2.bf16.msra.mxu0 %v4856_v3  ;;  %v4933_v3 = vld [vmem:[%s6566_s2 + $0x12c0] ss:$16 sps:$4 sm:$0xff]  }
 0x33d   :  { %3306 = vmatprep.subr.bf16.mxu0 %v4864_v23  ;;  %v4934_v23 = vld [vmem:[%s6566_s2 + $0x11c0] ss:$16 sps:$4 sm:$0xff]  }
 0x33f   :  { %v2345_v9 = vpop.f32.mrf.mxu0 }
 0x340   :  { %3307 = vmatpush2.bf16.msra.mxu0 %v4862_v10  ;;  %v4935_v10 = vld [vmem:[%s6566_s2 + $0x12a0] ss:$16 sps:$4 sm:$0xff]  }
 0x341   :  { %v2386_v17 = vpop.f32.mrf.mxu1  ;;  %3308 = vmatprep.subr.bf16.mxu0 %v4870_v46  ;;  %v2347_v52 = vpop.f32.mrf.mxu0  ;;  %v4936_v46 = vld [vmem:[%s6566_s2 + $0x11a0] ss:$16 sps:$4 sm:$0xff]  }
 0x342   :  { %v2387_v54 = vadd.f32 %v2386_v17, %v2345_v9  ;;  %v4937_v9 = vld [vmem:[%s6566_s2 + $0x1280] ss:$16 sps:$4 sm:$0xff]  }
 0x343   :  { %v2388_v27 = vpop.f32.mrf.mxu1  ;;  %v2349_v28 = vpop.f32.mrf.mxu0  ;;  %v4939_v17 = vld [vmem:[%s6566_s2 + $0x1260] ss:$16 sps:$4 sm:$0xff]  }
 0x344   :  { %v2395_v29 = vmax.f32 %v6202_v24, %v2387_v54  ;;  %v2389_v30 = vadd.f32 %v2388_v27, %v2347_v52  ;;  %3309 = vmatpush2.bf16.msra.mxu0 %v4868_v25  ;;  %v4938_v25 = vld [vmem:[%s6566_s2 + $0x1180] ss:$16 sps:$4 sm:$0xff]  }
 0x345   :  { %v2390_v34 = vpop.f32.mrf.mxu1  ;;  %3310 = vmatprep.subr.bf16.mxu0 %v4876_v53  ;;  %v2350_v35 = vpop.f32.mrf.mxu0  ;;  %v4940_v52 = vld [vmem:[%s6566_s2 + $0x1160] ss:$16 sps:$4 sm:$0xff]  }
 0x346   :  { %v2422_v36 = vadd.f32 %v2411_v55, %v2395_v29  ;;  %v2396_v37 = vmax.f32 %v6207_v26, %v2389_v30  ;;  %v4888_v26 = vld [vmem:[%s6566_s2 + $0xfc4] ss:$16 sps:$4 sm:$0xff]   ;;  %v4941_v54 = vld [vmem:[%s6566_s2 + $0x1240] ss:$16 sps:$4 sm:$0xff]  }
 0x347   :  { %v2391_v24 = vpop.f32.mrf.mxu1  ;;  %v4942_v55 = vld [vmem:[%s6566_s2 + $0x1140] ss:$16 sps:$4 sm:$0xff]  }
 0x348   :  { %v2423_v38 = vadd.f32 %v2415_v31, %v2396_v37  ;;  %3311 = vmatpush2.bf16.msra.mxu0 %v4874_v33  ;;  %v2426_v32 = vmax.f32 %v2422_v36, 0.0  ;;  %v4943_v29 = vld [vmem:[%s6566_s2 + $0x1220] ss:$16 sps:$4 sm:$0xff]  }
 0x349   :  { %3312 = vmatprep.subr.bf16.mxu0 %v4882_v12  ;;  %v4944_v30 = vld [vmem:[%s6566_s2 + $0x1120] ss:$16 sps:$4 sm:$0xff]   ;;  %v4988_v12 = vmov 0.0  }
 0x34a   :  { %v2427_v40 = vmax.f32 %v2423_v38, 0.0  ;;  %v6340_v44 = vpack.c.bf16 %v2426_v32, %v2426_v32  ;;  %v4945_v33 = vld [vmem:[%s6566_s2 + $0x1200] ss:$16 sps:$4 sm:$0xff]  }
 0x34b   :  { %v4946_v34 = vld [vmem:[%s6566_s2 + $0x1100] ss:$16 sps:$4 sm:$0xff]  }
 0x34c   :  { %3313 = vmatpush2.bf16.msra.mxu0 %v4880_v15  ;;  %v2431_v42 = vpack.c.bf16 %v2427_v40, %v2427_v40  ;;  %v4947_v35 = vld [vmem:[%s6566_s2 + $0x13e0] ss:$16 sps:$4 sm:$0xff]  }
 0x34d   :  { %4224 = vmatprep.subr.bf16.mxu0 %v4931_v20  ;;  %v4948_v36 = vld [vmem:[%s6566_s2 + $0x13c0] ss:$16 sps:$4 sm:$0xff]  }
 0x34e   :  { %2889 = vmatprep.mubr.bf16.mxu1 %v2431_v42  ;;  %v4949_v37 = vld [vmem:[%s6566_s2 + $0x13a0] ss:$16 sps:$4 sm:$0xff]  }
 0x34f   :  { %3315 = vmatmul.mubr.bf16.vlgmr.msra.gmra.mxu0 %v6238_v60  ;;  %2890 = vmatmul.mubr.bf16.vlgmr.msra.gmra.mxu1 %v6340_v44  ;;  %v4903_v60 = vld [vmem:[%s6566_s2 + $0xf24] ss:$16 sps:$4 sm:$0xff]   ;;  %v4950_v24 = vld [vmem:[%s6566_s2 + $0x1380] ss:$16 sps:$4 sm:$0xff]  }
 0x350   :  { %3324 = vmatpush1.bf16.msra.mxu1 %v4883_v43  ;;  %3355 = vmatprep.mubr.bf16.mxu1 %v2431_v42  ;;  %v4951_v38 = vld [vmem:[%s6566_s2 + $0x1360] ss:$16 sps:$4 sm:$0xff]  }
 0x351   :  { %3325 = vmatprep.subr.bf16.mxu1 %v4888_v26  ;;  %4225 = vmatpush3.bf16.msra.mxu0 %v4932_v22 }
 0x352   :  { %4226 = vmatprep.subr.bf16.mxu0 %v4933_v3 }
 0x354   :  { %3326 = vmatpush1.bf16.msra.mxu1 %v4886_v45 }
 0x355   :  { %3327 = vmatprep.subr.bf16.mxu1 %v4891_v48  ;;  %4227 = vmatpush3.bf16.msra.mxu0 %v4934_v23 }
 0x356   :  { %4228 = vmatprep.subr.bf16.mxu0 %v4935_v10 }
 0x358   :  { %3328 = vmatpush1.bf16.msra.mxu1 %v4889_v49 }
 0x359   :  { %3329 = vmatprep.subr.bf16.mxu1 %v4894_v50  ;;  %4229 = vmatpush3.bf16.msra.mxu0 %v4936_v46  ;;  %v4191_v50 = vld [vmem:[%s6569_s3 + $0x3] ss:$8 sm:$0x3] }
 0x35a   :  { %4230 = vmatprep.subr.bf16.mxu0 %v4937_v9 }
 0x35c   :  { %3330 = vmatpush1.bf16.msra.mxu1 %v4892_v51 }
 0x35d   :  { %3331 = vmatprep.subr.bf16.mxu1 %v4897_v56  ;;  %4231 = vmatpush3.bf16.msra.mxu0 %v4938_v25  ;;  %v4961_v25 = vld [vmem:[%s6566_s2 + $0x1420] ss:$16 sps:$4 sm:$0xff]  }
 0x35e   :  { %4232 = vmatprep.subr.bf16.mxu0 %v4939_v17  ;;  %v4962_v17 = vld [vmem:[%s6566_s2 + $0x1400] ss:$16 sps:$4 sm:$0xff]  }
 0x360   :  { %3332 = vmatpush1.bf16.msra.mxu1 %v4895_v57  ;;  %v3372_v57 = vrot.slane %v4191_v50, %v5277_v11  ;;  %v4952_v11 = vld [vmem:[%s6566_s2 + $0x1340] ss:$16 sps:$4 sm:$0xff]  }
 0x361   :  { %3333 = vmatprep.subr.bf16.mxu1 %v4900_v58  ;;  %4233 = vmatpush3.bf16.msra.mxu0 %v4940_v52  ;;  %v3572_v52 = vld [vmem:[%s6569_s3 + $0x5] ss:$0 sm:$0xff] }
 0x362   :  { %4234 = vmatprep.subr.bf16.mxu0 %v4941_v54 }
 0x364   :  { %3334 = vmatpush1.bf16.msra.mxu1 %v4898_v59 }
 0x365   :  { %3335 = vmatprep.subr.bf16.mxu1 %v4903_v60  ;;  %4235 = vmatpush3.bf16.msra.mxu0 %v4942_v55 }
 0x366   :  { %4236 = vmatprep.subr.bf16.mxu0 %v4943_v29 }
 0x368   :  { %3336 = vmatpush1.bf16.msra.mxu1 %v4901_v21  ;;  %v3376_v21 = vrot.slane %v4191_v50, %v5284_v14  ;;  %v4953_v14 = vld [vmem:[%s6566_s2 + $0x1320] ss:$16 sps:$4 sm:$0xff]  }
 0x369   :  { %3337 = vmatprep.subr.bf16.mxu1 %v4906_v39  ;;  %4237 = vmatpush3.bf16.msra.mxu0 %v4944_v30 }
 0x36a   :  { %4238 = vmatprep.subr.bf16.mxu0 %v4945_v33 }
 0x36c   :  { %3338 = vmatpush1.bf16.msra.mxu1 %v4904_v61 }
 0x36d   :  { %3339 = vmatprep.subr.bf16.mxu1 %v4909_v62  ;;  %4239 = vmatpush3.bf16.msra.mxu0 %v4946_v34 }
 0x36e   :  { %4284 = vmatprep.subr.bf16.mxu0 %v4988_v12 }
 0x370   :  { %3340 = vmatpush2.bf16.msra.mxu1 %v4907_v63 }
 0x371   :  { %3341 = vmatprep.subr.bf16.mxu1 %v4912_v0 }
 0x374   :  { %3342 = vmatpush2.bf16.msra.mxu1 %v4910_v1 }
 0x375   :  { %3343 = vmatprep.subr.bf16.mxu1 %v4915_v2 }
 0x378   :  { %3344 = vmatpush2.bf16.msra.mxu1 %v4913_v4 }
 0x379   :  { %3345 = vmatprep.subr.bf16.mxu1 %v4918_v5 }
 0x37c   :  { %3346 = vmatpush2.bf16.msra.mxu1 %v4916_v6  ;;  %v4954_v6 = vld [vmem:[%s6566_s2 + $0x1300] ss:$16 sps:$4 sm:$0xff]  }
 0x37d   :  { %3347 = vmatprep.subr.bf16.mxu1 %v4921_v7  ;;  %v4955_v7 = vld [vmem:[%s6566_s2 + $0x14e0] ss:$16 sps:$4 sm:$0xff]  }
 0x380   :  { %3348 = vmatpush2.bf16.msra.mxu1 %v4919_v8  ;;  %v4956_v8 = vld [vmem:[%s6566_s2 + $0x14c0] ss:$16 sps:$4 sm:$0xff]  }
 0x381   :  { %3349 = vmatprep.subr.bf16.mxu1 %v4924_v13  ;;  %v4957_v13 = vld [vmem:[%s6566_s2 + $0x14a0] ss:$16 sps:$4 sm:$0xff]  }
 0x384   :  { %3350 = vmatpush2.bf16.msra.mxu1 %v4922_v16  ;;  %v4958_v16 = vld [vmem:[%s6566_s2 + $0x1480] ss:$16 sps:$4 sm:$0xff]  }
 0x385   :  { %3351 = vmatprep.subr.bf16.mxu1 %v4927_v41  ;;  %v4959_v41 = vld [vmem:[%s6566_s2 + $0x1460] ss:$16 sps:$4 sm:$0xff]  }
 0x388   :  { %3352 = vmatpush2.bf16.msra.mxu1 %v4925_v18  ;;  %v4960_v18 = vld [vmem:[%s6566_s2 + $0x1440] ss:$16 sps:$4 sm:$0xff]  }
 0x389   :  { %3353 = vmatprep.subr.bf16.mxu1 %v4930_v19 }
 0x38c   :  { %3354 = vmatpush2.bf16.msra.mxu1 %v4928_v47  ;;  %v3417_v47 = vld [vmem:[%s6569_s3 + $0x4] ss:$0 sm:$0xff] }
 0x38d   :  { %4264 = vmatprep.subr.bf16.mxu1 %v4988_v12 }
 0x38f   :  { %3356 = vmatmul.mubr.bf16.vlgmr.msra.gmra.mxu1 %v6340_v44 }
 0x390   :  { %4265 = vmatpush3.bf16.msra.mxu1 %v4947_v35  ;;  %4280 = vmatprep.mubr.msk.bf16.mxu1 %vm4989_vm8, %v4988_v12 }
 0x391   :  { %4266 = vmatprep.subr.bf16.mxu1 %v4988_v12 }
 0x394   :  { %4267 = vmatpush3.bf16.msra.mxu1 %v4948_v36 }
 0x395   :  { %4268 = vmatprep.subr.bf16.mxu1 %v4988_v12 }
 0x398   :  { %4269 = vmatpush3.bf16.msra.mxu1 %v4949_v37 }
 0x399   :  { %4270 = vmatprep.subr.bf16.mxu1 %v4988_v12 }
 0x39c   :  { %4271 = vmatpush3.bf16.msra.mxu1 %v4950_v24 }
 0x39d   :  { %4272 = vmatprep.subr.bf16.mxu1 %v4988_v12 }
 0x3a0   :  { %4273 = vmatpush3.bf16.msra.mxu1 %v4951_v38 }
 0x3a1   :  { %4274 = vmatprep.subr.bf16.mxu1 %v4988_v12 }
 0x3a4   :  { %4275 = vmatpush3.bf16.msra.mxu1 %v4952_v11 }
 0x3a5   :  { %4276 = vmatprep.subr.bf16.mxu1 %v4988_v12 }
 0x3a8   :  { %4277 = vmatpush3.bf16.msra.mxu1 %v4953_v14 }
 0x3a9   :  { %4278 = vmatprep.subr.bf16.mxu1 %v4988_v12 }
 0x3ac   :  { %4279 = vmatpush3.bf16.msra.mxu1 %v4954_v6 }
 0x3cf   :  { %v2850_v53 = vpop.f32.mrf.mxu0 }
 0x3d1   :  { %v2852_v27 = vpop.f32.mrf.mxu0 }
 0x3d3   :  { %v2854_v28 = vpop.f32.mrf.mxu0 }
 0x3d5   :  { %v2855_v31 = vpop.f32.mrf.mxu0 }
 0x3d6   :  { %v3679_v31 = vld [vmem:[%s6569_s3 + $0x6] ss:$0 sm:$0xff] }
 0x40f   :  { %v3316_v15 = vpop.f32.mrf.mxu0  ;;  %v2891_v32 = vpop.f32.mrf.mxu1 }
 0x410   :  { %v2892_v40 = vadd.f32 %v2891_v32, %v2850_v53 }
 0x411   :  { %v3318_v42 = vpop.f32.mrf.mxu0  ;;  %v2893_v43 = vpop.f32.mrf.mxu1 }
 0x412   :  { %v2894_v44 = vadd.f32 %v2893_v43, %v2852_v27 }
 0x413   :  { %v3320_v26 = vpop.f32.mrf.mxu0  ;;  %v2895_v45 = vpop.f32.mrf.mxu1 }
 0x415   :  { %v3321_v48 = vpop.f32.mrf.mxu0  ;;  %v2896_v49 = vpop.f32.mrf.mxu1 }
 0x44f   :  { %v3357_v51 = vpop.f32.mrf.mxu1 }
 0x450   :  { %v3358_v56 = vadd.f32 %v3357_v51, %v3316_v15 }
 0x451   :  { %v3359_v58 = vpop.f32.mrf.mxu1 }
 0x452   :  { %v3364_v59 = vmax.f32 %v2892_v40, %v3358_v56  ;;  %v3360_v60 = vadd.f32 %v3359_v58, %v3318_v42 }
 0x453   :  { %v3361_v39 = vpop.f32.mrf.mxu1 }
 0x454   :  { %v3379_v61 = vadd.f32 %v3372_v57, %v3364_v59  ;;  %v3365_v62 = vmax.f32 %v2894_v44, %v3360_v60 }
 0x455   :  { %v3362_v63 = vpop.f32.mrf.mxu1 }
 0x456   :  { %v3380_v0 = vadd.f32 %v3376_v21, %v3365_v62  ;;  %v3381_v1 = vmax.f32 %v3379_v61, 0.0 }
 0x458   :  { %v3382_v2 = vmax.f32 %v3380_v0, 0.0  ;;  %v3383_v5 = vpack.c.bf16 %v3381_v1, %v3381_v1 }
 0x45a   :  { %v3384_v4 = vpack.c.bf16 %v3382_v2, %v3382_v2 }
 0x45c   :  { %3546 = vmatprep.mubr.bf16.mxu0 %v3384_v4 }
 0x45d   :  { %3547 = vmatmul.mubr.bf16.vlgmr.msra.gmra.mxu0 %v3383_v5 }
 0x45e   :  { %4300 = vmatprep.mubr.msk.bf16.mxu0 %vm4989_vm8, %v4988_v12  ;;  %4285 = vmatpush3.bf16.msra.mxu0 %v4955_v7 }
 0x45f   :  { %4286 = vmatprep.subr.bf16.mxu0 %v4988_v12 }
 0x462   :  { %4287 = vmatpush3.bf16.msra.mxu0 %v4956_v8 }
 0x463   :  { %4288 = vmatprep.subr.bf16.mxu0 %v4988_v12 }
 0x466   :  { %4289 = vmatpush3.bf16.msra.mxu0 %v4957_v13 }
 0x467   :  { %4290 = vmatprep.subr.bf16.mxu0 %v4988_v12 }
 0x46a   :  { %4291 = vmatpush3.bf16.msra.mxu0 %v4958_v16 }
 0x46b   :  { %4292 = vmatprep.subr.bf16.mxu0 %v4988_v12 }
 0x46e   :  { %4293 = vmatpush3.bf16.msra.mxu0 %v4959_v41 }
 0x46f   :  { %4294 = vmatprep.subr.bf16.mxu0 %v4988_v12 }
 0x472   :  { %4295 = vmatpush3.bf16.msra.mxu0 %v4960_v18 }
 0x473   :  { %4296 = vmatprep.subr.bf16.mxu0 %v4988_v12 }
 0x476   :  { %4297 = vmatpush3.bf16.msra.mxu0 %v4961_v25 }
 0x477   :  { %4298 = vmatprep.subr.bf16.mxu0 %v4988_v12 }
 0x47a   :  { %4299 = vmatpush3.bf16.msra.mxu0 %v4962_v17 }
 0x51d   :  { %v4240_v19 = vpop.f32.mrf.mxu0 }
 0x51f   :  { %v4241_v20 = vpop.f32.mrf.mxu0 }
 0x520   :  { %v4242_v22 = vadd.f32 %v4241_v20, %v4240_v19 }
 0x521   :  { %v4243_v3 = vpop.f32.mrf.mxu0 }
 0x522   :  { %v3549_v23 = vadd.f32 %v4242_v22, %v3417_v47 }
 0x523   :  { %v4244_v10 = vpop.f32.mrf.mxu0 }
 0x524   :  { %v3554_v46 = vmax.f32 %v3549_v23, 0.0 }
 0x526   :  { %v3555_v9 = vpack.c.bf16 %v3554_v46, %v3554_v46 }
 0x528   :  { %4281 = vmatmul.mubr.bf16.vlgmr.msra.gmra.mxu1 %v3555_v9 }
 0x5e8   :  { %v3655_v53 = vpop.f32.mrf.mxu1 }
 0x5e9   :  { %v3656_v54 = vadd.f32 %v3655_v53, %v3572_v52 }
 0x5ea   :  { %v4282_v55 = vpop.f32.mrf.mxu1 }
 0x5eb   :  { %v3661_v27 = vmax.f32 %v3656_v54, 0.0 }
 0x5ec   :  { %v3658_v28 = vpop.f32.mrf.mxu1 }
 0x5ed   :  { %v3662_v29 = vpack.c.bf16 %v3661_v27, %v3661_v27 }
 0x5ee   :  { %v4283_v30 = vpop.f32.mrf.mxu1 }
 0x5ef   :  { %4301 = vmatmul.mubr.bf16.vlgmr.msra.gmra.mxu0 %v3662_v29 }
 0x6af   :  { %v3762_v33 = vpop.f32.mrf.mxu0 }
 0x6b0   :  { %v3763_v34 = vadd.f32 %v3762_v33, %v3679_v31 }
 0x6b1   :  { %v4302_v35 = vpop.f32.mrf.mxu0 }
 0x6b2   :  { %3768 = vst [vmem:[%s6570_s4] sm:$0xff] %v3763_v34 }
 0x6b3   :  { %v3765_v12 = vpop.f32.mrf.mxu0 }
 0x6b5   :  { %v4303_v36 = vpop.f32.mrf.mxu0 }

</bundles_post_ra>
